<compile_context>
chip_gen: v5e
topology: v5e:2x2
jax: 0.10.0
libtpu: 0.0.40
codegen_flags: <defaults>
</compile_context>

<pallas_src>
import jax
import jax.numpy as jnp
from jax.experimental import pallas as pl
from jax.experimental.pallas import tpu as pltpu

# ---------------- sizes (module defaults: hidden=128, output=6, edge_dim=7) --
N_NODES    = 32          # total nodes across the batch of graphs
N_EDGES    = 64          # total directed edges
INPUT_DIM  = 16
EDGE_DIM   = 7
HIDDEN     = 128
OUTPUT_DIM = 6
N_GRAPHS   = 2
N_LAYERS   = 4
ENC_IN     = 32          # INPUT_DIM + EDGE_DIM + 2 bias-indicator cols, padded
NE         = N_NODES + N_EDGES


# ------------------------------- kernel --------------------------------------
def gine_kernel(data_ref, encw_ref, gat_ref, sdst_ref, pool_ref,
                w_ref, b_ref, out_ref, xcat_ref):
    f32, bf16 = jnp.float32, jnp.bfloat16

    # Fused x/edge encoders (+ biases via indicator columns): one matmul.
    #   xcat rows [0:N)    = x_encoder(x)
    #   xcat rows [N:N+E)  = edge_encoder(edge_attr)   (constant across layers)
    xcat_ref[...] = jnp.dot(data_ref[...], encw_ref[...],
                            preferred_element_type=f32)

    gat  = gat_ref[...]          # [E, N+E] bf16 = [one_hot(src) | I_E]
    sdst = sdst_ref[...]         # [N, E]   bf16 = one_hot(dst)^T

    for l in range(N_LAYERS):                       # statically unrolled
        x = xcat_ref[0:N_NODES, :]                  # [N, H] f32
        # gather x[src] AND add edge_attr in one dot: (gsrc | I) @ [x; ea]
        msg = jnp.dot(gat, xcat_ref[...].astype(bf16),
                      preferred_element_type=f32)   # [E, H]
        msg = jnp.maximum(msg, 0.0)                 # relu(x_j + e_ij)
        agg = jnp.dot(sdst, msg.astype(bf16),
                      preferred_element_type=f32)   # scatter-add -> [N, H]
        w = w_ref[l]                                # [H, 2H] bf16 = [w1 | w2*bn]
        h = (x + agg).astype(bf16)                  # GINE: (1+eps)*x + agg, eps=0
        h = jnp.dot(h, w[:, 0:HIDDEN],
                    preferred_element_type=f32) + b_ref[l:l + 1, :]
        h = jnp.maximum(h, 0.0).astype(bf16)
        h = jnp.dot(h, w[:, HIDDEN:2 * HIDDEN],
                    preferred_element_type=f32) + b_ref[N_LAYERS + l:N_LAYERS + l + 1, :]
        h = jnp.maximum(h, 0.0)                     # BN folded; ReLU; dropout=id
        xcat_ref[0:N_NODES, :] = x + h              # residual

    # global mean pool + head (bn_final folded into lin1; lin2 lane-padded)
    x = xcat_ref[0:N_NODES, :].astype(bf16)
    hw = w_ref[N_LAYERS]                            # [H, 2H] bf16 = [lin1*bn | lin2 pad]
    pooled = jnp.dot(pool_ref[...], x, preferred_element_type=f32)      # [G, H]
    z = jnp.dot(pooled.astype(bf16), hw[:, 0:HIDDEN],
                preferred_element_type=f32) + b_ref[2 * N_LAYERS:2 * N_LAYERS + 1, :]
    z = jnp.maximum(z, 0.0).astype(bf16)            # ReLU; dropout = identity
    out = jnp.dot(z, hw[:, HIDDEN:2 * HIDDEN], preferred_element_type=f32)
    out_ref[...] = (out[:, 0:OUTPUT_DIM]
                    + b_ref[2 * N_LAYERS + 1:2 * N_LAYERS + 2, 0:OUTPUT_DIM])


def improved_gine_forward(p):
    """p: dict of packed slabs. Returns [N_GRAPHS, OUTPUT_DIM] float32."""
    args = [p["data"], p["enc_w"], p["gat"], p["sdst"], p["pool"],
            p["w"], p["b"]]
    vmem = pl.BlockSpec(memory_space=pltpu.MemorySpace.VMEM)
    return pl.pallas_call(
        gine_kernel,
        out_shape=jax.ShapeDtypeStruct((N_GRAPHS, OUTPUT_DIM), jnp.float32),
        in_specs=[vmem] * len(args),
        out_specs=vmem,
        scratch_shapes=[pltpu.VMEM((NE, HIDDEN), jnp.float32)],
        cost_estimate=pl.CostEstimate(
            flops=17_800_000, transcendentals=0, bytes_accessed=370_000),
    )(*args)


# --------------------------- parameter / data setup --------------------------
def _linear_init(key, fan_in, fan_out):
    kw, kb = jax.random.split(key)
    bound = 1.0 / jnp.sqrt(float(fan_in))
    w = jax.random.uniform(kw, (fan_in, fan_out), jnp.float32, -bound, bound)
    b = jax.random.uniform(kb, (fan_out,), jnp.float32, -bound, bound)
    return w, b


def build_raw(key):
    """Module-style parameters + graph data (f32 / int)."""
    keys = jax.random.split(key, 12)
    x = jax.random.normal(keys[0], (N_NODES, INPUT_DIM), jnp.float32)
    edge_attr = jax.random.normal(keys[1], (N_EDGES, EDGE_DIM), jnp.float32)

    half_n, half_e = N_NODES // 2, N_EDGES // 2
    src0 = jax.random.randint(keys[2], (half_e,), 0, half_n)
    dst0 = jax.random.randint(keys[3], (half_e,), 0, half_n)
    src1 = jax.random.randint(keys[4], (half_e,), half_n, N_NODES)
    dst1 = jax.random.randint(keys[5], (half_e,), half_n, N_NODES)
    src = jnp.concatenate([src0, src1])
    dst = jnp.concatenate([dst0, dst1])
    batch = jnp.concatenate([jnp.zeros(half_n, jnp.int32), jnp.ones(half_n, jnp.int32)])

    wxe, bxe = _linear_init(keys[6], INPUT_DIM, HIDDEN)
    wee, bee = _linear_init(keys[7], EDGE_DIM, HIDDEN)

    lk = jax.random.split(keys[8], 2 * N_LAYERS)
    w1, b1, w2, b2 = [], [], [], []
    for l in range(N_LAYERS):
        a, c = _linear_init(lk[2 * l], HIDDEN, HIDDEN)
        d, e = _linear_init(lk[2 * l + 1], HIDDEN, HIDDEN)
        w1.append(a); b1.append(c); w2.append(d); b2.append(e)
    w1 = jnp.stack(w1); b1 = jnp.stack(b1); w2 = jnp.stack(w2); b2 = jnp.stack(b2)

    wl1, bl1 = _linear_init(keys[9], HIDDEN, HIDDEN)
    wl2, bl2 = _linear_init(keys[10], HIDDEN, OUTPUT_DIM)

    # BatchNorm1d reset state, eval mode: gamma=1, beta=0, mean=0, var=1
    return dict(
        x=x, edge_attr=edge_attr, src=src, dst=dst, batch=batch,
        wxe=wxe, bxe=bxe, wee=wee, bee=bee,
        w1=w1, b1=b1, w2=w2, b2=b2,
        bn_gamma=jnp.ones((N_LAYERS, HIDDEN), jnp.float32),
        bn_beta=jnp.zeros((N_LAYERS, HIDDEN), jnp.float32),
        bn_mean=jnp.zeros((N_LAYERS, HIDDEN), jnp.float32),
        bn_var=jnp.ones((N_LAYERS, HIDDEN), jnp.float32),
        wl1=wl1, bl1=bl1, wl2=wl2, bl2=bl2,
        bnf_gamma=jnp.ones((HIDDEN,), jnp.float32),
        bnf_beta=jnp.zeros((HIDDEN,), jnp.float32),
        bnf_mean=jnp.zeros((HIDDEN,), jnp.float32),
        bnf_var=jnp.ones((HIDDEN,), jnp.float32),
    )


def pack_inputs(r):
    """Fold BN, fuse encoders/gather, pack into a few lane-dense slabs."""
    f32, bf16 = jnp.float32, jnp.bfloat16
    eps_bn = 1e-5

    # data slab: [x | edge_attr | bias-indicator columns], padded to ENC_IN
    data = jnp.zeros((NE, ENC_IN), f32)
    data = data.at[:N_NODES, :INPUT_DIM].set(r["x"])
    data = data.at[:N_NODES, INPUT_DIM + EDGE_DIM].set(1.0)
    data = data.at[N_NODES:, INPUT_DIM:INPUT_DIM + EDGE_DIM].set(r["edge_attr"])
    data = data.at[N_NODES:, INPUT_DIM + EDGE_DIM + 1].set(1.0)

    enc_w = jnp.zeros((ENC_IN, HIDDEN), f32)
    enc_w = enc_w.at[:INPUT_DIM, :].set(r["wxe"])
    enc_w = enc_w.at[INPUT_DIM:INPUT_DIM + EDGE_DIM, :].set(r["wee"])
    enc_w = enc_w.at[INPUT_DIM + EDGE_DIM, :].set(r["bxe"])
    enc_w = enc_w.at[INPUT_DIM + EDGE_DIM + 1, :].set(r["bee"])

    # graph structure (exactly representable in bf16: 0/1 and 1/16)
    gsrc = jax.nn.one_hot(r["src"], N_NODES, dtype=f32)                   # [E, N]
    gat = jnp.concatenate([gsrc, jnp.eye(N_EDGES, dtype=f32)], axis=1)    # [E, N+E]
    sdst = jax.nn.one_hot(r["dst"], N_NODES, dtype=f32).T                 # [N, E]
    onehot_b = jax.nn.one_hot(r["batch"], N_GRAPHS, dtype=f32)            # [N, G]
    pool = (onehot_b / onehot_b.sum(axis=0, keepdims=True)).T             # [G, N]

    # per-layer GIN MLP with eval-mode BN folded into the 2nd linear
    s = r["bn_gamma"] / jnp.sqrt(r["bn_var"] + eps_bn)                    # [L, H]
    t = r["bn_beta"] - r["bn_mean"] * s
    w2f = r["w2"] * s[:, None, :]
    b2f = r["b2"] * s + t
    lw = jnp.concatenate([r["w1"], w2f], axis=-1)                         # [L, H, 2H]

    # head: bn_final folded into lin1; lin2 zero-padded to lane-dense width
    sf = r["bnf_gamma"] / jnp.sqrt(r["bnf_var"] + eps_bn)
    tf = r["bnf_beta"] - r["bnf_mean"] * sf
    wl1f = r["wl1"] * sf[None, :]
    bl1f = r["bl1"] * sf + tf
    wl2p = jnp.zeros((HIDDEN, HIDDEN), f32).at[:, :OUTPUT_DIM].set(r["wl2"])
    hw = jnp.concatenate([wl1f, wl2p], axis=1)[None]                      # [1, H, 2H]

    # ONE stacked weight slab (layers 0..3 = GIN MLPs, index 4 = head)
    w_all = jnp.concatenate([lw, hw], axis=0)                             # [5, H, 2H]

    # ONE bias slab: rows 0..3 = b1, 4..7 = b2', 8 = head b1', 9 = head b2
    bias = jnp.zeros((16, HIDDEN), f32)
    bias = bias.at[0:N_LAYERS].set(r["b1"])
    bias = bias.at[N_LAYERS:2 * N_LAYERS].set(b2f)
    bias = bias.at[2 * N_LAYERS].set(bl1f)
    bias = bias.at[2 * N_LAYERS + 1, :OUTPUT_DIM].set(r["bl2"])

    return dict(
        data=data.astype(bf16), enc_w=enc_w.astype(bf16),
        gat=gat.astype(bf16), sdst=sdst.astype(bf16), pool=pool.astype(bf16),
        w=w_all.astype(bf16), b=bias.astype(f32),
    )


# ------------------------------ pure-JAX reference ---------------------------
def reference_forward(p):
    """Module forward in eval mode (GINEConv eps=0, BN folded into linears,
    dropout=identity) in plain JAX, mirroring the kernel's bf16-operand /
    f32-accumulate matmul precision."""
    f32, bf16 = jnp.float32, jnp.bfloat16
    xcat = jnp.dot(p["data"], p["enc_w"], preferred_element_type=f32)
    for l in range(N_LAYERS):
        x = xcat[:N_NODES]
        msg = jnp.maximum(jnp.dot(p["gat"], xcat.astype(bf16),
                                  preferred_element_type=f32), 0.0)
        agg = jnp.dot(p["sdst"], msg.astype(bf16), preferred_element_type=f32)
        w = p["w"][l]
        h = jnp.dot((x + agg).astype(bf16), w[:, :HIDDEN],
                    preferred_element_type=f32) + p["b"][l]
        h = jnp.maximum(h, 0.0)
        h = jnp.dot(h.astype(bf16), w[:, HIDDEN:],
                    preferred_element_type=f32) + p["b"][N_LAYERS + l]
        h = jnp.maximum(h, 0.0)
        xcat = xcat.at[:N_NODES].set(x + h)
    pooled = jnp.dot(p["pool"], xcat[:N_NODES].astype(bf16),
                     preferred_element_type=f32)
    hw = p["w"][N_LAYERS]
    z = jnp.dot(pooled.astype(bf16), hw[:, :HIDDEN],
                preferred_element_type=f32) + p["b"][2 * N_LAYERS]
    z = jnp.maximum(z, 0.0)
    out = jnp.dot(z.astype(bf16), hw[:, HIDDEN:], preferred_element_type=f32)
    return out[:, :OUTPUT_DIM] + p["b"][2 * N_LAYERS + 1, :OUTPUT_DIM]


if __name__ == "__main__":
    key = jax.random.PRNGKey(0)
    raw = build_raw(key)
    packed = pack_inputs(raw)

    out = improved_gine_forward(packed)
    out = jax.block_until_ready(out)

    ref = reference_forward(packed)
    assert out.shape == (N_GRAPHS, OUTPUT_DIM)
    assert jnp.allclose(out, ref, atol=1e-3, rtol=1e-3), (
        "Pallas output mismatch vs reference, max abs diff = "
        f"{float(jnp.max(jnp.abs(out - ref)))}")

    print("KERNEL_OK")
</pallas_src>

<mosaic_0001>
module attributes {stable_mosaic.version = 11 : i64} {
  func.func @gine_kernel(%arg0: memref<96x32xbf16, #tpu.memory_space<vmem>>, %arg1: memref<32x128xbf16, #tpu.memory_space<vmem>>, %arg2: memref<64x96xbf16, #tpu.memory_space<vmem>>, %arg3: memref<32x64xbf16, #tpu.memory_space<vmem>>, %arg4: memref<2x32xbf16, #tpu.memory_space<vmem>>, %arg5: memref<5x128x256xbf16, #tpu.memory_space<vmem>>, %arg6: memref<16x128xf32, #tpu.memory_space<vmem>>, %arg7: memref<2x6xf32, #tpu.memory_space<vmem>>, %arg8: memref<96x128xf32, #tpu.memory_space<vmem>>) attributes {dimension_semantics = [], scalar_prefetch = 0 : i64, scratch_operands = 1 : i64, tpu.core_type = #tpu.core_type<tc>} {
    %c0 = arith.constant 0 : index
    %c0_0 = arith.constant 0 : index
    %0 = vector.load %arg0[%c0, %c0_0] : memref<96x32xbf16, #tpu.memory_space<vmem>>, vector<96x32xbf16>
    %c0_1 = arith.constant 0 : index
    %c0_2 = arith.constant 0 : index
    %1 = vector.load %arg1[%c0_1, %c0_2] : memref<32x128xbf16, #tpu.memory_space<vmem>>, vector<32x128xbf16>
    %cst = arith.constant dense<0.000000e+00> : vector<96x128xf32>
    %2 = tpu.matmul %0, %1, %cst {dimension_numbers = #tpu.dot_dimension_numbers<[1], [0], [0], [1], [0, 0, 1, 1], [], []>} : vector<96x32xbf16>, vector<32x128xbf16>, vector<96x128xf32> -> vector<96x128xf32>
    %c0_3 = arith.constant 0 : index
    %c0_4 = arith.constant 0 : index
    %3 = vector.load %arg8[%c0_3, %c0_4] : memref<96x128xf32, #tpu.memory_space<vmem>>, vector<96x128xf32>
    tpu.vector_store %arg8[%c0_3, %c0_4], %2 {strides = array<i32>} : memref<96x128xf32, #tpu.memory_space<vmem>>, vector<96x128xf32>,
    %c0_5 = arith.constant 0 : index
    %c0_6 = arith.constant 0 : index
    %4 = vector.load %arg2[%c0_5, %c0_6] : memref<64x96xbf16, #tpu.memory_space<vmem>>, vector<64x96xbf16>
    %c0_7 = arith.constant 0 : index
    %c0_8 = arith.constant 0 : index
    %5 = vector.load %arg3[%c0_7, %c0_8] : memref<32x64xbf16, #tpu.memory_space<vmem>>, vector<32x64xbf16>
    %c0_9 = arith.constant 0 : index
    %c0_10 = arith.constant 0 : index
    %6 = vector.load %arg8[%c0_9, %c0_10] : memref<96x128xf32, #tpu.memory_space<vmem>>, vector<32x128xf32>
    %c0_11 = arith.constant 0 : index
    %c0_12 = arith.constant 0 : index
    %7 = vector.load %arg8[%c0_11, %c0_12] : memref<96x128xf32, #tpu.memory_space<vmem>>, vector<96x128xf32>
    %8 = arith.truncf %7 : vector<96x128xf32> to vector<96x128xbf16>
    %cst_13 = arith.constant dense<0.000000e+00> : vector<64x128xf32>
    %9 = tpu.matmul %4, %8, %cst_13 {dimension_numbers = #tpu.dot_dimension_numbers<[1], [0], [0], [1], [0, 0, 1, 1], [], []>} : vector<64x96xbf16>, vector<96x128xbf16>, vector<64x128xf32> -> vector<64x128xf32>
    %cst_14 = arith.constant 0.000000e+00 : f32
    %10 = vector.broadcast %cst_14 : f32 to vector<64x128xf32>
    %11 = arith.maximumf %9, %10 : vector<64x128xf32>
    %12 = arith.truncf %11 : vector<64x128xf32> to vector<64x128xbf16>
    %cst_15 = arith.constant dense<0.000000e+00> : vector<32x128xf32>
    %13 = tpu.matmul %5, %12, %cst_15 {dimension_numbers = #tpu.dot_dimension_numbers<[1], [0], [0], [1], [0, 0, 1, 1], [], []>} : vector<32x64xbf16>, vector<64x128xbf16>, vector<32x128xf32> -> vector<32x128xf32>
    %c0_16 = arith.constant 0 : index
    %c0_17 = arith.constant 0 : index
    %c0_18 = arith.constant 0 : index
    %14 = vector.load %arg5[%c0_16, %c0_17, %c0_18] : memref<5x128x256xbf16, #tpu.memory_space<vmem>>, vector<1x128x256xbf16>
    %15 = vector.shape_cast %14 : vector<1x128x256xbf16> to vector<128x256xbf16>
    %16 = arith.addf %6, %13 : vector<32x128xf32>
    %17 = arith.truncf %16 : vector<32x128xf32> to vector<32x128xbf16>
    %18 = vector.extract_strided_slice %15 {offsets = [0, 0], sizes = [128, 128], strides = [1, 1]} : vector<128x256xbf16> to vector<128x128xbf16>
    %cst_19 = arith.constant dense<0.000000e+00> : vector<32x128xf32>
    %19 = tpu.matmul %17, %18, %cst_19 {dimension_numbers = #tpu.dot_dimension_numbers<[1], [0], [0], [1], [0, 0, 1, 1], [], []>} : vector<32x128xbf16>, vector<128x128xbf16>, vector<32x128xf32> -> vector<32x128xf32>
    %c0_20 = arith.constant 0 : index
    %c0_21 = arith.constant 0 : index
    %20 = vector.load %arg6[%c0_20, %c0_21] : memref<16x128xf32, #tpu.memory_space<vmem>>, vector<1x128xf32>
    %21 = vector.broadcast %20 : vector<1x128xf32> to vector<32x128xf32>
    %22 = arith.addf %19, %21 : vector<32x128xf32>
    %cst_22 = arith.constant 0.000000e+00 : f32
    %23 = vector.broadcast %cst_22 : f32 to vector<32x128xf32>
    %24 = arith.maximumf %22, %23 : vector<32x128xf32>
    %25 = arith.truncf %24 : vector<32x128xf32> to vector<32x128xbf16>
    %26 = vector.extract_strided_slice %15 {offsets = [0, 128], sizes = [128, 128], strides = [1, 1]} : vector<128x256xbf16> to vector<128x128xbf16>
    %cst_23 = arith.constant dense<0.000000e+00> : vector<32x128xf32>
    %27 = tpu.matmul %25, %26, %cst_23 {dimension_numbers = #tpu.dot_dimension_numbers<[1], [0], [0], [1], [0, 0, 1, 1], [], []>} : vector<32x128xbf16>, vector<128x128xbf16>, vector<32x128xf32> -> vector<32x128xf32>
    %c4 = arith.constant 4 : index
    %c0_24 = arith.constant 0 : index
    %28 = vector.load %arg6[%c4, %c0_24] : memref<16x128xf32, #tpu.memory_space<vmem>>, vector<1x128xf32>
    %29 = vector.broadcast %28 : vector<1x128xf32> to vector<32x128xf32>
    %30 = arith.addf %27, %29 : vector<32x128xf32>
    %cst_25 = arith.constant 0.000000e+00 : f32
    %31 = vector.broadcast %cst_25 : f32 to vector<32x128xf32>
    %32 = arith.maximumf %30, %31 : vector<32x128xf32>
    %33 = arith.addf %6, %32 : vector<32x128xf32>
    %c0_26 = arith.constant 0 : index
    %c0_27 = arith.constant 0 : index
    %34 = vector.load %arg8[%c0_26, %c0_27] : memref<96x128xf32, #tpu.memory_space<vmem>>, vector<32x128xf32>
    tpu.vector_store %arg8[%c0_26, %c0_27], %33 {strides = array<i32>} : memref<96x128xf32, #tpu.memory_space<vmem>>, vector<32x128xf32>,
    %c0_28 = arith.constant 0 : index
    %c0_29 = arith.constant 0 : index
    %35 = vector.load %arg8[%c0_28, %c0_29] : memref<96x128xf32, #tpu.memory_space<vmem>>, vector<32x128xf32>
    %c0_30 = arith.constant 0 : index
    %c0_31 = arith.constant 0 : index
    %36 = vector.load %arg8[%c0_30, %c0_31] : memref<96x128xf32, #tpu.memory_space<vmem>>, vector<96x128xf32>
    %37 = arith.truncf %36 : vector<96x128xf32> to vector<96x128xbf16>
    %cst_32 = arith.constant dense<0.000000e+00> : vector<64x128xf32>
    %38 = tpu.matmul %4, %37, %cst_32 {dimension_numbers = #tpu.dot_dimension_numbers<[1], [0], [0], [1], [0, 0, 1, 1], [], []>} : vector<64x96xbf16>, vector<96x128xbf16>, vector<64x128xf32> -> vector<64x128xf32>
    %cst_33 = arith.constant 0.000000e+00 : f32
    %39 = vector.broadcast %cst_33 : f32 to vector<64x128xf32>
    %40 = arith.maximumf %38, %39 : vector<64x128xf32>
    %41 = arith.truncf %40 : vector<64x128xf32> to vector<64x128xbf16>
    %cst_34 = arith.constant dense<0.000000e+00> : vector<32x128xf32>
    %42 = tpu.matmul %5, %41, %cst_34 {dimension_numbers = #tpu.dot_dimension_numbers<[1], [0], [0], [1], [0, 0, 1, 1], [], []>} : vector<32x64xbf16>, vector<64x128xbf16>, vector<32x128xf32> -> vector<32x128xf32>
    %c1 = arith.constant 1 : index
    %c0_35 = arith.constant 0 : index
    %c0_36 = arith.constant 0 : index
    %43 = vector.load %arg5[%c1, %c0_35, %c0_36] : memref<5x128x256xbf16, #tpu.memory_space<vmem>>, vector<1x128x256xbf16>
    %44 = vector.shape_cast %43 : vector<1x128x256xbf16> to vector<128x256xbf16>
    %45 = arith.addf %35, %42 : vector<32x128xf32>
    %46 = arith.truncf %45 : vector<32x128xf32> to vector<32x128xbf16>
    %47 = vector.extract_strided_slice %44 {offsets = [0, 0], sizes = [128, 128], strides = [1, 1]} : vector<128x256xbf16> to vector<128x128xbf16>
    %cst_37 = arith.constant dense<0.000000e+00> : vector<32x128xf32>
    %48 = tpu.matmul %46, %47, %cst_37 {dimension_numbers = #tpu.dot_dimension_numbers<[1], [0], [0], [1], [0, 0, 1, 1], [], []>} : vector<32x128xbf16>, vector<128x128xbf16>, vector<32x128xf32> -> vector<32x128xf32>
    %c1_38 = arith.constant 1 : index
    %c0_39 = arith.constant 0 : index
    %49 = vector.load %arg6[%c1_38, %c0_39] : memref<16x128xf32, #tpu.memory_space<vmem>>, vector<1x128xf32>
    %50 = vector.broadcast %49 : vector<1x128xf32> to vector<32x128xf32>
    %51 = arith.addf %48, %50 : vector<32x128xf32>
    %cst_40 = arith.constant 0.000000e+00 : f32
    %52 = vector.broadcast %cst_40 : f32 to vector<32x128xf32>
    %53 = arith.maximumf %51, %52 : vector<32x128xf32>
    %54 = arith.truncf %53 : vector<32x128xf32> to vector<32x128xbf16>
    %55 = vector.extract_strided_slice %44 {offsets = [0, 128], sizes = [128, 128], strides = [1, 1]} : vector<128x256xbf16> to vector<128x128xbf16>
    %cst_41 = arith.constant dense<0.000000e+00> : vector<32x128xf32>
    %56 = tpu.matmul %54, %55, %cst_41 {dimension_numbers = #tpu.dot_dimension_numbers<[1], [0], [0], [1], [0, 0, 1, 1], [], []>} : vector<32x128xbf16>, vector<128x128xbf16>, vector<32x128xf32> -> vector<32x128xf32>
    %c5 = arith.constant 5 : index
    %c0_42 = arith.constant 0 : index
    %57 = vector.load %arg6[%c5, %c0_42] : memref<16x128xf32, #tpu.memory_space<vmem>>, vector<1x128xf32>
    %58 = vector.broadcast %57 : vector<1x128xf32> to vector<32x128xf32>
    %59 = arith.addf %56, %58 : vector<32x128xf32>
    %cst_43 = arith.constant 0.000000e+00 : f32
    %60 = vector.broadcast %cst_43 : f32 to vector<32x128xf32>
    %61 = arith.maximumf %59, %60 : vector<32x128xf32>
    %62 = arith.addf %35, %61 : vector<32x128xf32>
    %c0_44 = arith.constant 0 : index
    %c0_45 = arith.constant 0 : index
    %63 = vector.load %arg8[%c0_44, %c0_45] : memref<96x128xf32, #tpu.memory_space<vmem>>, vector<32x128xf32>
    tpu.vector_store %arg8[%c0_44, %c0_45], %62 {strides = array<i32>} : memref<96x128xf32, #tpu.memory_space<vmem>>, vector<32x128xf32>,
    %c0_46 = arith.constant 0 : index
    %c0_47 = arith.constant 0 : index
    %64 = vector.load %arg8[%c0_46, %c0_47] : memref<96x128xf32, #tpu.memory_space<vmem>>, vector<32x128xf32>
    %c0_48 = arith.constant 0 : index
    %c0_49 = arith.constant 0 : index
    %65 = vector.load %arg8[%c0_48, %c0_49] : memref<96x128xf32, #tpu.memory_space<vmem>>, vector<96x128xf32>
    %66 = arith.truncf %65 : vector<96x128xf32> to vector<96x128xbf16>
    %cst_50 = arith.constant dense<0.000000e+00> : vector<64x128xf32>
    %67 = tpu.matmul %4, %66, %cst_50 {dimension_numbers = #tpu.dot_dimension_numbers<[1], [0], [0], [1], [0, 0, 1, 1], [], []>} : vector<64x96xbf16>, vector<96x128xbf16>, vector<64x128xf32> -> vector<64x128xf32>
    %cst_51 = arith.constant 0.000000e+00 : f32
    %68 = vector.broadcast %cst_51 : f32 to vector<64x128xf32>
    %69 = arith.maximumf %67, %68 : vector<64x128xf32>
    %70 = arith.truncf %69 : vector<64x128xf32> to vector<64x128xbf16>
    %cst_52 = arith.constant dense<0.000000e+00> : vector<32x128xf32>
    %71 = tpu.matmul %5, %70, %cst_52 {dimension_numbers = #tpu.dot_dimension_numbers<[1], [0], [0], [1], [0, 0, 1, 1], [], []>} : vector<32x64xbf16>, vector<64x128xbf16>, vector<32x128xf32> -> vector<32x128xf32>
    %c2 = arith.constant 2 : index
    %c0_53 = arith.constant 0 : index
    %c0_54 = arith.constant 0 : index
    %72 = vector.load %arg5[%c2, %c0_53, %c0_54] : memref<5x128x256xbf16, #tpu.memory_space<vmem>>, vector<1x128x256xbf16>
    %73 = vector.shape_cast %72 : vector<1x128x256xbf16> to vector<128x256xbf16>
    %74 = arith.addf %64, %71 : vector<32x128xf32>
    %75 = arith.truncf %74 : vector<32x128xf32> to vector<32x128xbf16>
    %76 = vector.extract_strided_slice %73 {offsets = [0, 0], sizes = [128, 128], strides = [1, 1]} : vector<128x256xbf16> to vector<128x128xbf16>
    %cst_55 = arith.constant dense<0.000000e+00> : vector<32x128xf32>
    %77 = tpu.matmul %75, %76, %cst_55 {dimension_numbers = #tpu.dot_dimension_numbers<[1], [0], [0], [1], [0, 0, 1, 1], [], []>} : vector<32x128xbf16>, vector<128x128xbf16>, vector<32x128xf32> -> vector<32x128xf32>
    %c2_56 = arith.constant 2 : index
    %c0_57 = arith.constant 0 : index
    %78 = vector.load %arg6[%c2_56, %c0_57] : memref<16x128xf32, #tpu.memory_space<vmem>>, vector<1x128xf32>
    %79 = vector.broadcast %78 : vector<1x128xf32> to vector<32x128xf32>
    %80 = arith.addf %77, %79 : vector<32x128xf32>
    %cst_58 = arith.constant 0.000000e+00 : f32
    %81 = vector.broadcast %cst_58 : f32 to vector<32x128xf32>
    %82 = arith.maximumf %80, %81 : vector<32x128xf32>
    %83 = arith.truncf %82 : vector<32x128xf32> to vector<32x128xbf16>
    %84 = vector.extract_strided_slice %73 {offsets = [0, 128], sizes = [128, 128], strides = [1, 1]} : vector<128x256xbf16> to vector<128x128xbf16>
    %cst_59 = arith.constant dense<0.000000e+00> : vector<32x128xf32>
    %85 = tpu.matmul %83, %84, %cst_59 {dimension_numbers = #tpu.dot_dimension_numbers<[1], [0], [0], [1], [0, 0, 1, 1], [], []>} : vector<32x128xbf16>, vector<128x128xbf16>, vector<32x128xf32> -> vector<32x128xf32>
    %c6 = arith.constant 6 : index
    %c0_60 = arith.constant 0 : index
    %86 = vector.load %arg6[%c6, %c0_60] : memref<16x128xf32, #tpu.memory_space<vmem>>, vector<1x128xf32>
    %87 = vector.broadcast %86 : vector<1x128xf32> to vector<32x128xf32>
    %88 = arith.addf %85, %87 : vector<32x128xf32>
    %cst_61 = arith.constant 0.000000e+00 : f32
    %89 = vector.broadcast %cst_61 : f32 to vector<32x128xf32>
    %90 = arith.maximumf %88, %89 : vector<32x128xf32>
    %91 = arith.addf %64, %90 : vector<32x128xf32>
    %c0_62 = arith.constant 0 : index
    %c0_63 = arith.constant 0 : index
    %92 = vector.load %arg8[%c0_62, %c0_63] : memref<96x128xf32, #tpu.memory_space<vmem>>, vector<32x128xf32>
    tpu.vector_store %arg8[%c0_62, %c0_63], %91 {strides = array<i32>} : memref<96x128xf32, #tpu.memory_space<vmem>>, vector<32x128xf32>,
    %c0_64 = arith.constant 0 : index
    %c0_65 = arith.constant 0 : index
    %93 = vector.load %arg8[%c0_64, %c0_65] : memref<96x128xf32, #tpu.memory_space<vmem>>, vector<32x128xf32>
    %c0_66 = arith.constant 0 : index
    %c0_67 = arith.constant 0 : index
    %94 = vector.load %arg8[%c0_66, %c0_67] : memref<96x128xf32, #tpu.memory_space<vmem>>, vector<96x128xf32>
    %95 = arith.truncf %94 : vector<96x128xf32> to vector<96x128xbf16>
    %cst_68 = arith.constant dense<0.000000e+00> : vector<64x128xf32>
    %96 = tpu.matmul %4, %95, %cst_68 {dimension_numbers = #tpu.dot_dimension_numbers<[1], [0], [0], [1], [0, 0, 1, 1], [], []>} : vector<64x96xbf16>, vector<96x128xbf16>, vector<64x128xf32> -> vector<64x128xf32>
    %cst_69 = arith.constant 0.000000e+00 : f32
    %97 = vector.broadcast %cst_69 : f32 to vector<64x128xf32>
    %98 = arith.maximumf %96, %97 : vector<64x128xf32>
    %99 = arith.truncf %98 : vector<64x128xf32> to vector<64x128xbf16>
    %cst_70 = arith.constant dense<0.000000e+00> : vector<32x128xf32>
    %100 = tpu.matmul %5, %99, %cst_70 {dimension_numbers = #tpu.dot_dimension_numbers<[1], [0], [0], [1], [0, 0, 1, 1], [], []>} : vector<32x64xbf16>, vector<64x128xbf16>, vector<32x128xf32> -> vector<32x128xf32>
    %c3 = arith.constant 3 : index
    %c0_71 = arith.constant 0 : index
    %c0_72 = arith.constant 0 : index
    %101 = vector.load %arg5[%c3, %c0_71, %c0_72] : memref<5x128x256xbf16, #tpu.memory_space<vmem>>, vector<1x128x256xbf16>
    %102 = vector.shape_cast %101 : vector<1x128x256xbf16> to vector<128x256xbf16>
    %103 = arith.addf %93, %100 : vector<32x128xf32>
    %104 = arith.truncf %103 : vector<32x128xf32> to vector<32x128xbf16>
    %105 = vector.extract_strided_slice %102 {offsets = [0, 0], sizes = [128, 128], strides = [1, 1]} : vector<128x256xbf16> to vector<128x128xbf16>
    %cst_73 = arith.constant dense<0.000000e+00> : vector<32x128xf32>
    %106 = tpu.matmul %104, %105, %cst_73 {dimension_numbers = #tpu.dot_dimension_numbers<[1], [0], [0], [1], [0, 0, 1, 1], [], []>} : vector<32x128xbf16>, vector<128x128xbf16>, vector<32x128xf32> -> vector<32x128xf32>
    %c3_74 = arith.constant 3 : index
    %c0_75 = arith.constant 0 : index
    %107 = vector.load %arg6[%c3_74, %c0_75] : memref<16x128xf32, #tpu.memory_space<vmem>>, vector<1x128xf32>
    %108 = vector.broadcast %107 : vector<1x128xf32> to vector<32x128xf32>
    %109 = arith.addf %106, %108 : vector<32x128xf32>
    %cst_76 = arith.constant 0.000000e+00 : f32
    %110 = vector.broadcast %cst_76 : f32 to vector<32x128xf32>
    %111 = arith.maximumf %109, %110 : vector<32x128xf32>
    %112 = arith.truncf %111 : vector<32x128xf32> to vector<32x128xbf16>
    %113 = vector.extract_strided_slice %102 {offsets = [0, 128], sizes = [128, 128], strides = [1, 1]} : vector<128x256xbf16> to vector<128x128xbf16>
    %cst_77 = arith.constant dense<0.000000e+00> : vector<32x128xf32>
    %114 = tpu.matmul %112, %113, %cst_77 {dimension_numbers = #tpu.dot_dimension_numbers<[1], [0], [0], [1], [0, 0, 1, 1], [], []>} : vector<32x128xbf16>, vector<128x128xbf16>, vector<32x128xf32> -> vector<32x128xf32>
    %c7 = arith.constant 7 : index
    %c0_78 = arith.constant 0 : index
    %115 = vector.load %arg6[%c7, %c0_78] : memref<16x128xf32, #tpu.memory_space<vmem>>, vector<1x128xf32>
    %116 = vector.broadcast %115 : vector<1x128xf32> to vector<32x128xf32>
    %117 = arith.addf %114, %116 : vector<32x128xf32>
    %cst_79 = arith.constant 0.000000e+00 : f32
    %118 = vector.broadcast %cst_79 : f32 to vector<32x128xf32>
    %119 = arith.maximumf %117, %118 : vector<32x128xf32>
    %120 = arith.addf %93, %119 : vector<32x128xf32>
    %c0_80 = arith.constant 0 : index
    %c0_81 = arith.constant 0 : index
    %121 = vector.load %arg8[%c0_80, %c0_81] : memref<96x128xf32, #tpu.memory_space<vmem>>, vector<32x128xf32>
    tpu.vector_store %arg8[%c0_80, %c0_81], %120 {strides = array<i32>} : memref<96x128xf32, #tpu.memory_space<vmem>>, vector<32x128xf32>,
    %c0_82 = arith.constant 0 : index
    %c0_83 = arith.constant 0 : index
    %122 = vector.load %arg8[%c0_82, %c0_83] : memref<96x128xf32, #tpu.memory_space<vmem>>, vector<32x128xf32>
    %123 = arith.truncf %122 : vector<32x128xf32> to vector<32x128xbf16>
    %c4_84 = arith.constant 4 : index
    %c0_85 = arith.constant 0 : index
    %c0_86 = arith.constant 0 : index
    %124 = vector.load %arg5[%c4_84, %c0_85, %c0_86] : memref<5x128x256xbf16, #tpu.memory_space<vmem>>, vector<1x128x256xbf16>
    %125 = vector.shape_cast %124 : vector<1x128x256xbf16> to vector<128x256xbf16>
    %c0_87 = arith.constant 0 : index
    %c0_88 = arith.constant 0 : index
    %126 = vector.load %arg4[%c0_87, %c0_88] : memref<2x32xbf16, #tpu.memory_space<vmem>>, vector<2x32xbf16>
    %cst_89 = arith.constant dense<0.000000e+00> : vector<2x128xf32>
    %127 = tpu.matmul %126, %123, %cst_89 {dimension_numbers = #tpu.dot_dimension_numbers<[1], [0], [0], [1], [0, 0, 1, 1], [], []>} : vector<2x32xbf16>, vector<32x128xbf16>, vector<2x128xf32> -> vector<2x128xf32>
    %128 = arith.truncf %127 : vector<2x128xf32> to vector<2x128xbf16>
    %129 = vector.extract_strided_slice %125 {offsets = [0, 0], sizes = [128, 128], strides = [1, 1]} : vector<128x256xbf16> to vector<128x128xbf16>
    %cst_90 = arith.constant dense<0.000000e+00> : vector<2x128xf32>
    %130 = tpu.matmul %128, %129, %cst_90 {dimension_numbers = #tpu.dot_dimension_numbers<[1], [0], [0], [1], [0, 0, 1, 1], [], []>} : vector<2x128xbf16>, vector<128x128xbf16>, vector<2x128xf32> -> vector<2x128xf32>
    %c8 = arith.constant 8 : index
    %c0_91 = arith.constant 0 : index
    %131 = vector.load %arg6[%c8, %c0_91] : memref<16x128xf32, #tpu.memory_space<vmem>>, vector<1x128xf32>
    %132 = vector.broadcast %131 : vector<1x128xf32> to vector<2x128xf32>
    %133 = arith.addf %130, %132 : vector<2x128xf32>
    %cst_92 = arith.constant 0.000000e+00 : f32
    %134 = vector.broadcast %cst_92 : f32 to vector<2x128xf32>
    %135 = arith.maximumf %133, %134 : vector<2x128xf32>
    %136 = arith.truncf %135 : vector<2x128xf32> to vector<2x128xbf16>
    %137 = vector.extract_strided_slice %125 {offsets = [0, 128], sizes = [128, 128], strides = [1, 1]} : vector<128x256xbf16> to vector<128x128xbf16>
    %cst_93 = arith.constant dense<0.000000e+00> : vector<2x128xf32>
    %138 = tpu.matmul %136, %137, %cst_93 {dimension_numbers = #tpu.dot_dimension_numbers<[1], [0], [0], [1], [0, 0, 1, 1], [], []>} : vector<2x128xbf16>, vector<128x128xbf16>, vector<2x128xf32> -> vector<2x128xf32>
    %139 = vector.extract_strided_slice %138 {offsets = [0, 0], sizes = [2, 6], strides = [1, 1]} : vector<2x128xf32> to vector<2x6xf32>
    %c9 = arith.constant 9 : index
    %c0_94 = arith.constant 0 : index
    %140 = vector.load %arg6[%c9, %c0_94] : memref<16x128xf32, #tpu.memory_space<vmem>>, vector<1x6xf32>
    %141 = vector.broadcast %140 : vector<1x6xf32> to vector<2x6xf32>
    %142 = arith.addf %139, %141 : vector<2x6xf32>
    %c0_95 = arith.constant 0 : index
    %c0_96 = arith.constant 0 : index
    %143 = vector.load %arg7[%c0_95, %c0_96] : memref<2x6xf32, #tpu.memory_space<vmem>>, vector<2x6xf32>
    tpu.vector_store %arg7[%c0_95, %c0_96], %142 {strides = array<i32>} : memref<2x6xf32, #tpu.memory_space<vmem>>, vector<2x6xf32>,
    return
  }
}

</mosaic_0001>

<bundles_post_ra>
// kernel: tpu_custom_call.1
= control target key start
LH: loop header
LB: loop body
LE: loop exit
PB: predicated region body
PF: predicated region fallthrough
CT: control target
= control target key end

     0   :  { %12 = vsyncpa [#allocation4], 0  ;;  %s2267_s0 = inlined_call_operand.vmem [shape: bf16[96,32], index: 0, kind: input, shape index: {}]   ;;  %s2268_s1 = inlined_call_operand.vmem [shape: bf16[32,128], index: 1, kind: input, shape index: {}]   ;;  %s2269_s2 = inlined_call_operand.vmem [shape: bf16[64,96], index: 2, kind: input, shape index: {}]   ;;  %s2270_s3 = inlined_call_operand.vmem [shape: bf16[32,64], index: 3, kind: input, shape index: {}]   ;;  %s2271_s4 = inlined_call_operand.vmem [shape: bf16[2,32], index: 4, kind: input, shape index: {}]   ;;  %s2272_s5 = inlined_call_operand.hbm [shape: bf16[5,128,256], index: 5, kind: input, shape index: {}]   ;;  %s2273_s6 = inlined_call_operand.hbm [shape: f32[16,128], index: 6, kind: input, shape index: {}]   ;;  %s2274_s7 = inlined_call_operand.hbm [shape: f32[2,6], index: 7, kind: output, shape index: {}]  }
   0x1   :  { %13 = vsyncpa [#allocation7], 0 }
   0x2   :  { %14 = vsyncpa [#allocation5], 0  ;;  %s29_s26 = sshll.u32 %s2272_s5, 4  ;;  %s1997_s27 = smov [#allocation3]   ;;  %s30_s26 = int_to_ptr.hbm [resolvable:$true] %s29_s26 }
   0x3   :  { %s31_s28 = sshll.u32 %s1997_s27, 4  ;;  %s42_s8 = sshll.u32 %s2273_s6, 4  ;;  %s32_s28 = int_to_ptr.vmem [resolvable:$true] %s31_s28  ;;  %s43_s8 = int_to_ptr.hbm [resolvable:$true] %s42_s8 }
   0x4   :  { %s1998_s9 = smov 128   ;;  %s1999_s10 = smov 8  }
   0x5   :  { %37 = dma.hbm_to_vmem [thread:$0]  %s30_s26, 10240, %s32_s28, [#allocation4], %s1998_s9, %s1998_s9, %s1999_s10  }
   0x6   :  { %s2000_s11 = smov [#allocation6]  }
   0x7   :  { %s44_s12 = sshll.u32 %s2000_s11, 4  ;;  %s45_s12 = int_to_ptr.vmem [resolvable:$true] %s44_s12 }
   0x8   :  { %50 = dma.hbm_to_vmem [thread:$0]  %s43_s8, 256, %s45_s12, [#allocation7], %s1998_s9, %s1998_s9, %s1999_s10  }
   0x9   :  { %1991 = dma.done.wait [#allocation4], 10240  }
   0xa   :  { %1992 = vsyncadd [#allocation4], 4294957056 }
   0xb   :  { %1993 = dma.done.wait [#allocation7], 256  }
   0xc   :  { %1994 = vsyncadd [#allocation7], 4294967040  ;;  %v1817_v0 = vld [vmem:[%s2268_s1 + $0x8] sm:$0xff]  ;;  %v1816_v1 = vld [vmem:[%s2268_s1] sm:$0xff]  ;;  %vm118_vm0 = vcmask 261120   ;;  %vm242_vm1 = vcmask 785408  }
   0xd   :  { %143 = vmatpush.bf16.msra.mxu0 %v1817_v0  ;;  %v1810_v2 = vld [vmem:[%s2267_s0] sm:$0xff]  ;;  %v1811_v3 = vld [vmem:[%s2267_s0 + $0x8] sm:$0xff]  ;;  %v1812_v4 = vld [vmem:[%s2267_s0 + $0x10] sm:$0xff]  ;;  %vm306_vm2 = vcmask 523264   ;;  %s1392_s6 = sshll.u32 %s2274_s7, 4  ;;  %vm1383_vm3 = vcmask 41984   ;;  %s1393_s6 = int_to_ptr.hbm [resolvable:$true] %s1392_s6 }
   0xe   :  { %v1813_v5 = vld [vmem:[%s2267_s0 + $0x18] sm:$0xff]  ;;  %v1814_v6 = vld [vmem:[%s2267_s0 + $0x20] sm:$0xff]  ;;  %v1815_v7 = vld [vmem:[%s2267_s0 + $0x28] sm:$0xff] }
   0xf   :  { %v1501_v12 = vld [vmem:[#allocation3 + $0x70] sm:$0xf]  ;;  %v1839_v13 = vld [vmem:[#allocation3 + $0x74] sm:$0xf0]  ;;  %v1497_v15 = vld [vmem:[#allocation3 + $0x60] sm:$0xf] }
  0x10   :  { %v1502_v14 = vor.u32 %v1839_v13, %v1501_v12  ;;  %v1837_v16 = vld [vmem:[#allocation3 + $0x64] sm:$0xf0]  ;;  %v1493_v19 = vld [vmem:[#allocation3 + $0x50] sm:$0xf]  ;;  %v1835_v20 = vld [vmem:[#allocation3 + $0x54] sm:$0xf0] }
  0x11   :  { %144 = vmatpush.bf16.msra.mxu0 %v1816_v1  ;;  %v1498_v18 = vor.u32 %v1837_v16, %v1497_v15  ;;  %v1494_v21 = vor.u32 %v1835_v20, %v1493_v19  ;;  %v1489_v22 = vld [vmem:[#allocation3 + $0x40] sm:$0xf]  ;;  %v1833_v23 = vld [vmem:[#allocation3 + $0x44] sm:$0xf0]  ;;  %v1485_v26 = vld [vmem:[#allocation3 + $0x30] sm:$0xf] }
  0x12   :  { %404 = vmatpush.bf16.msra.mxu3 %v1502_v14  ;;  %v1490_v25 = vor.u32 %v1833_v23, %v1489_v22  ;;  %v1831_v27 = vld [vmem:[#allocation3 + $0x34] sm:$0xf0]  ;;  %v1481_v29 = vld [vmem:[#allocation3 + $0x20] sm:$0xf]  ;;  %v1829_v30 = vld [vmem:[#allocation3 + $0x24] sm:$0xf0] }
  0x13   :  { %v1486_v28 = vor.u32 %v1831_v27, %v1485_v26  ;;  %v1482_v32 = vor.u32 %v1829_v30, %v1481_v29  ;;  %v1477_v33 = vld [vmem:[#allocation3 + $0x10] sm:$0xf]  ;;  %v1827_v34 = vld [vmem:[#allocation3 + $0x14] sm:$0xf0]  ;;  %v1473_v36 = vld [vmem:[#allocation3] sm:$0xf] }
  0x14   :  { %1435 = vmatmul.msk.bf16.vlgmr.msra.gmra.mxu0 %vm118_vm0, %v1810_v2  ;;  %v1478_v35 = vor.u32 %v1827_v34, %v1477_v33  ;;  %v1825_v37 = vld [vmem:[#allocation3 + $0x4] sm:$0xf0]  ;;  %v2109_v50 = vld [vmem:[%s2269_s2] sm:$0xff]  ;;  %v2123_v52 = vld [vmem:[%s2269_s2 + $0x10] sm:$0xff] }
  0x15   :  { %v1474_v39 = vor.u32 %v1825_v37, %v1473_v36  ;;  %v2116_v51 = vld [vmem:[%s2269_s2 + $0x8] sm:$0xff]  ;;  %v2130_v53 = vld [vmem:[%s2269_s2 + $0x18] sm:$0xff]  ;;  %v2137_v14 = vld [vmem:[%s2270_s3] sm:$0xff] }
  0x16   :  { %405 = vmatpush.bf16.msra.mxu3 %v1498_v18  ;;  %v2144_v15 = vld [vmem:[%s2270_s3 + $0x8] sm:$0xff]  ;;  %v1838_v16 = vld [vmem:[#allocation3 + $0x74] sm:$0xf]  ;;  %v1836_v18 = vld [vmem:[#allocation3 + $0x64] sm:$0xf] }
  0x17   :  { %v1527_v20 = vld [vmem:[#allocation3 + $0x68] sm:$0xf0]  ;;  %v1834_v23 = vld [vmem:[#allocation3 + $0x54] sm:$0xf]  ;;  %v1832_v26 = vld [vmem:[#allocation3 + $0x44] sm:$0xf] }
  0x18   :  { %v1530_v22 = vor.u32 %v1836_v18, %v1527_v20  ;;  %v1519_v27 = vld [vmem:[#allocation3 + $0x48] sm:$0xf0]  ;;  %v1910_v18 = vld [vmem:[#allocation6 + $0x4] ss:$0 sm:$0xff] }
  0x19   :  { %v1522_v29 = vor.u32 %v1832_v26, %v1519_v27 }
  0x1a   :  { %406 = vmatpush.bf16.msra.mxu3 %v1494_v21 }
  0x1e   :  { %407 = vmatpush.bf16.msra.mxu3 %v1490_v25 }
  0x22   :  { %408 = vmatpush.bf16.msra.mxu3 %v1486_v28 }
  0x24   :  { %1436 = vmatmul.msk.bf16.gmra.mxu0 %vm118_vm0, %v1811_v3 }
  0x26   :  { %409 = vmatpush.bf16.msra.mxu3 %v1482_v32 }
  0x2a   :  { %410 = vmatpush.bf16.msra.mxu3 %v1478_v35 }
  0x2e   :  { %411 = vmatpush.bf16.msra.mxu3 %v1474_v39  ;;  %v1515_v39 = vld [vmem:[#allocation3 + $0x38] sm:$0xf0] }
  0x34   :  { %1437 = vmatmul.msk.bf16.gmra.mxu0 %vm118_vm0, %v1812_v4 }
  0x44   :  { %1438 = vmatmul.msk.bf16.gmra.mxu0 %vm118_vm0, %v1813_v5 }
  0x54   :  { %1439 = vmatmul.msk.bf16.gmra.mxu0 %vm118_vm0, %v1814_v6 }
  0x64   :  { %1440 = vmatmul.msk.bf16.gmra.mxu0 %vm118_vm0, %v1815_v7 }
  0x91   :  { %v2078_v8 = vpop.f32.mrf.mxu0 }
  0x99   :  { %v2080_v9 = vpop.f32.mrf.mxu0 }
  0x9a   :  { %v216_v49 = vpack.c.bf16 %v2080_v9, %v2078_v8 }
  0xa1   :  { %v2082_v10 = vpop.f32.mrf.mxu0 }
  0xa9   :  { %v2084_v11 = vpop.f32.mrf.mxu0 }
  0xaa   :  { %v217_v48 = vpack.c.bf16 %v2084_v11, %v2082_v10 }
  0xb1   :  { %v156_v17 = vpop.f32.mrf.mxu0 }
  0xb9   :  { %v158_v24 = vpop.f32.mrf.mxu0 }
  0xba   :  { %v2098_v47 = vpack.c.bf16 %v158_v24, %v156_v17  ;;  %v1531_v17 = vld [vmem:[#allocation3 + $0x78] sm:$0xf0] }
  0xbb   :  { %v1534_v19 = vor.u32 %v1838_v16, %v1531_v17  ;;  %v1523_v24 = vld [vmem:[#allocation3 + $0x58] sm:$0xf0] }
  0xbc   :  { %v1526_v25 = vor.u32 %v1834_v23, %v1523_v24 }
  0xc1   :  { %v161_v31 = vpop.f32.mrf.mxu0 }
  0xc9   :  { %v163_v38 = vpop.f32.mrf.mxu0 }
  0xca   :  { %v2094_v46 = vpack.c.bf16 %v163_v38, %v161_v31  ;;  %v1830_v38 = vld [vmem:[#allocation3 + $0x34] sm:$0xf] }
  0xd1   :  { %v166_v40 = vpop.f32.mrf.mxu0 }
  0xd9   :  { %v168_v41 = vpop.f32.mrf.mxu0 }
  0xda   :  { %v2090_v45 = vpack.c.bf16 %v168_v41, %v166_v40  ;;  %v1518_v40 = vor.u32 %v1830_v38, %v1515_v39  ;;  %v1828_v41 = vld [vmem:[#allocation3 + $0x24] sm:$0xf] }
  0xe1   :  { %v171_v42 = vpop.f32.mrf.mxu0 }
  0xe9   :  { %v173_v43 = vpop.f32.mrf.mxu0 }
  0xea   :  { %v2086_v44 = vpack.c.bf16 %v173_v43, %v171_v42  ;;  %v1511_v42 = vld [vmem:[#allocation3 + $0x28] sm:$0xf0] }
  0xeb   :  { %v1514_v43 = vor.u32 %v1828_v41, %v1511_v42  ;;  %v1571_v42 = vld [vmem:[#allocation3 + $0xf0] sm:$0xf] }
  0xec   :  { %257 = vmatpush.bf16.msra.mxu1 %v2086_v44  ;;  %518 = vmatpush.bf16.msrb.mxu3 %v2086_v44 }
  0xf0   :  { %258 = vmatpush.bf16.msra.mxu1 %v2090_v45  ;;  %519 = vmatpush.bf16.msrb.mxu3 %v2090_v45 }
  0xf4   :  { %259 = vmatpush.bf16.msra.mxu1 %v2094_v46  ;;  %520 = vmatpush.bf16.msrb.mxu3 %v2094_v46 }
  0xf8   :  { %260 = vmatpush.bf16.msra.mxu1 %v2098_v47  ;;  %521 = vmatpush.bf16.msrb.mxu3 %v2098_v47 }
  0xfc   :  { %261 = vmatpush.bf16.msra.mxu1 %v217_v48  ;;  %v1826_v48 = vld [vmem:[#allocation3 + $0x14] sm:$0xf] }
 0x100   :  { %262 = vmatpush.bf16.msra.mxu1 %v216_v49  ;;  %v1507_v49 = vld [vmem:[#allocation3 + $0x18] sm:$0xf0] }
 0x103   :  { %1457 = vmatmul.msk.bf16.vlgmr.msra.gmra.mxu1 %vm242_vm1, %v2109_v50 }
 0x113   :  { %1458 = vmatmul.msk.bf16.gmra.mxu1 %vm242_vm1, %v2116_v51 }
 0x123   :  { %1459 = vmatmul.msk.bf16.gmra.mxu1 %vm242_vm1, %v2123_v52 }
 0x133   :  { %1460 = vmatmul.msk.bf16.gmra.mxu1 %vm242_vm1, %v2130_v53 }
 0x180   :  { %v264_v54 = vpop.f32.mrf.mxu1 }
 0x181   :  { %v284_v12 = vmax.f32 %v264_v54, 0.0  ;;  %v1510_v54 = vor.u32 %v1826_v48, %v1507_v49  ;;  %v1567_v48 = vld [vmem:[#allocation3 + $0xe0] sm:$0xf] }
 0x188   :  { %v266_v55 = vpop.f32.mrf.mxu1 }
 0x189   :  { %v285_v6 = vmax.f32 %v266_v55, 0.0  ;;  %v1824_v55 = vld [vmem:[#allocation3 + $0x4] sm:$0xf] }
 0x18b   :  { %v292_v13 = vpack.c.bf16 %v285_v6, %v284_v12 }
 0x190   :  { %v269_v56 = vpop.f32.mrf.mxu1 }
 0x191   :  { %v286_v5 = vmax.f32 %v269_v56, 0.0  ;;  %v1503_v56 = vld [vmem:[#allocation3 + $0x8] sm:$0xf0] }
 0x198   :  { %v271_v57 = vpop.f32.mrf.mxu1 }
 0x199   :  { %v287_v3 = vmax.f32 %v271_v57, 0.0  ;;  %v1506_v57 = vor.u32 %v1824_v55, %v1503_v56  ;;  %v1853_v55 = vld [vmem:[#allocation3 + $0xe4] sm:$0xf0] }
 0x19b   :  { %v293_v7 = vpack.c.bf16 %v287_v3, %v286_v5 }
 0x1a0   :  { %v274_v58 = vpop.f32.mrf.mxu1 }
 0x1a1   :  { %v288_v2 = vmax.f32 %v274_v58, 0.0 }
 0x1a8   :  { %v276_v59 = vpop.f32.mrf.mxu1 }
 0x1a9   :  { %v289_v0 = vmax.f32 %v276_v59, 0.0  ;;  %v1909_v59 = vld [vmem:[#allocation6] ss:$0 sm:$0xff] }
 0x1ab   :  { %v294_v4 = vpack.c.bf16 %v289_v0, %v288_v2 }
 0x1b0   :  { %v279_v60 = vpop.f32.mrf.mxu1 }
 0x1b1   :  { %v290_v62 = vmax.f32 %v279_v60, 0.0 }
 0x1b8   :  { %v281_v61 = vpop.f32.mrf.mxu1 }
 0x1b9   :  { %v291_v63 = vmax.f32 %v281_v61, 0.0 }
 0x1bb   :  { %v295_v1 = vpack.c.bf16 %v291_v63, %v290_v62 }
 0x1bd   :  { %317 = vmatpush.bf16.msra.mxu2 %v295_v1 }
 0x1c1   :  { %318 = vmatpush.bf16.msra.mxu2 %v294_v4 }
 0x1c5   :  { %319 = vmatpush.bf16.msra.mxu2 %v293_v7 }
 0x1c9   :  { %320 = vmatpush.bf16.msra.mxu2 %v292_v13 }
 0x1cc   :  { %1469 = vmatmul.msk.bf16.vlgmr.msra.gmra.mxu2 %vm306_vm2, %v2137_v14 }
 0x1cd   :  { %463 = vmatpush.bf16.msrb.mxu2 %v1534_v19 }
 0x1d1   :  { %464 = vmatpush.bf16.msrb.mxu2 %v1530_v22 }
 0x1d5   :  { %465 = vmatpush.bf16.msrb.mxu2 %v1526_v25 }
 0x1d9   :  { %466 = vmatpush.bf16.msrb.mxu2 %v1522_v29 }
 0x1dc   :  { %1470 = vmatmul.msk.bf16.gmra.mxu2 %vm306_vm2, %v2144_v15 }
 0x1dd   :  { %467 = vmatpush.bf16.msrb.mxu2 %v1518_v40 }
 0x1e1   :  { %468 = vmatpush.bf16.msrb.mxu2 %v1514_v43  ;;  %v1855_v43 = vld [vmem:[#allocation3 + $0xf4] sm:$0xf0] }
 0x1e5   :  { %469 = vmatpush.bf16.msrb.mxu2 %v1510_v54  ;;  %v1572_v54 = vor.u32 %v1855_v43, %v1571_v42 }
 0x1e7   :  { %649 = vmatpush.bf16.msrb.mxu1 %v1572_v54 }
 0x1e9   :  { %470 = vmatpush.bf16.msrb.mxu2 %v1506_v57 }
 0x24f   :  { %v322_v21 = vpop.f32.mrf.mxu2 }
 0x250   :  { %v348_v30 = vadd.f32 %v322_v21, %v2078_v8 }
 0x257   :  { %v324_v28 = vpop.f32.mrf.mxu2 }
 0x258   :  { %v349_v31 = vadd.f32 %v324_v28, %v2080_v9 }
 0x25a   :  { %v352_v32 = vpack.c.bf16 %v349_v31, %v348_v30 }
 0x25c   :  { %412 = vmatmul.bf16.vlgmr.msra.gmra.mxu3 %v352_v32 }
 0x25f   :  { %v327_v33 = vpop.f32.mrf.mxu2 }
 0x260   :  { %v350_v35 = vadd.f32 %v327_v33, %v2082_v10 }
 0x267   :  { %v329_v34 = vpop.f32.mrf.mxu2 }
 0x268   :  { %v351_v36 = vadd.f32 %v329_v34, %v2084_v11 }
 0x26a   :  { %v353_v37 = vpack.c.bf16 %v351_v36, %v350_v35 }
 0x26c   :  { %417 = vmatmul.bf16.gmra.mxu3 %v353_v37 }
 0x2df   :  { %v413_v58 = vpop.f32.mrf.mxu3 }
 0x2e0   :  { %v414_v60 = vadd.f32 %v1909_v59, %v413_v58  ;;  %v1568_v58 = vor.u32 %v1853_v55, %v1567_v48 }
 0x2e2   :  { %v423_v63 = vmax.f32 %v414_v60, 0.0  ;;  %v1851_v60 = vld [vmem:[#allocation3 + $0xd4] sm:$0xf0]  ;;  %650 = vmatpush.bf16.msrb.mxu1 %v1568_v58  ;;  %v1581_v58 = vld [vmem:[#allocation3 + $0xa8] sm:$0xf0] }
 0x2e7   :  { %v415_v61 = vpop.f32.mrf.mxu3 }
 0x2e8   :  { %v416_v62 = vadd.f32 %v1909_v59, %v415_v61 }
 0x2ea   :  { %v424_v0 = vmax.f32 %v416_v62, 0.0 }
 0x2ec   :  { %v427_v1 = vpack.c.bf16 %v424_v0, %v423_v63 }
 0x2ee   :  { %471 = vmatmul.bf16.vlgmr.msrb.gmra.mxu2 %v427_v1  ;;  %v1559_v1 = vld [vmem:[#allocation3 + $0xc0] sm:$0xf] }
 0x2ef   :  { %v418_v2 = vpop.f32.mrf.mxu3 }
 0x2f0   :  { %v419_v3 = vadd.f32 %v1909_v59, %v418_v2  ;;  %v1849_v2 = vld [vmem:[#allocation3 + $0xc4] sm:$0xf0] }
 0x2f2   :  { %v425_v6 = vmax.f32 %v419_v3, 0.0 }
 0x2f7   :  { %v420_v4 = vpop.f32.mrf.mxu3 }
 0x2f8   :  { %v421_v5 = vadd.f32 %v1909_v59, %v420_v4  ;;  %v1563_v59 = vld [vmem:[#allocation3 + $0xd0] sm:$0xf] }
 0x2f9   :  { %v1564_v0 = vor.u32 %v1851_v60, %v1563_v59  ;;  %v1842_v60 = vld [vmem:[#allocation3 + $0x94] sm:$0xf] }
 0x2fa   :  { %v426_v7 = vmax.f32 %v421_v5, 0.0  ;;  %v1560_v5 = vor.u32 %v1849_v2, %v1559_v1 }
 0x2fb   :  { %651 = vmatpush.bf16.msrb.mxu1 %v1564_v0  ;;  %v1573_v0 = vld [vmem:[#allocation3 + $0x88] sm:$0xf0] }
 0x2fc   :  { %v428_v12 = vpack.c.bf16 %v426_v7, %v425_v6  ;;  %v1555_v6 = vld [vmem:[#allocation3 + $0xb0] sm:$0xf]  ;;  %v1847_v7 = vld [vmem:[#allocation3 + $0xb4] sm:$0xf0] }
 0x2fe   :  { %476 = vmatmul.bf16.gmra.mxu2 %v428_v12  ;;  %v1556_v12 = vor.u32 %v1847_v7, %v1555_v6 }
 0x2ff   :  { %652 = vmatpush.bf16.msrb.mxu1 %v1560_v5 }
 0x303   :  { %653 = vmatpush.bf16.msrb.mxu1 %v1556_v12 }
 0x371   :  { %v472_v13 = vpop.f32.mrf.mxu2 }
 0x372   :  { %v473_v22 = vadd.f32 %v1910_v18, %v472_v13  ;;  %v1551_v13 = vld [vmem:[#allocation3 + $0xa0] sm:$0xf] }
 0x374   :  { %v482_v27 = vmax.f32 %v473_v22, 0.0  ;;  %v1841_v22 = vld [vmem:[#allocation3 + $0x84] sm:$0xf0] }
 0x376   :  { %v2164_v32 = vadd.f32 %v482_v27, %v2078_v8 }
 0x379   :  { %v474_v16 = vpop.f32.mrf.mxu2 }
 0x37a   :  { %v475_v20 = vadd.f32 %v1910_v18, %v474_v16  ;;  %v1845_v16 = vld [vmem:[#allocation3 + $0xa4] sm:$0xf0] }
 0x37c   :  { %v483_v25 = vmax.f32 %v475_v20, 0.0 }
 0x37e   :  { %v2159_v30 = vadd.f32 %v483_v25, %v2080_v9  ;;  %v1601_v25 = vld [vmem:[#allocation3 + $0xf8] sm:$0xf0] }
 0x380   :  { %v510_v33 = vpack.c.bf16 %v2159_v30, %v2164_v32 }
 0x381   :  { %v477_v17 = vpop.f32.mrf.mxu2 }
 0x382   :  { %v478_v19 = vadd.f32 %v1910_v18, %v477_v17  ;;  %v1552_v17 = vor.u32 %v1845_v16, %v1551_v13 }
 0x384   :  { %v484_v23 = vmax.f32 %v478_v19, 0.0  ;;  %v1843_v19 = vld [vmem:[#allocation3 + $0x94] sm:$0xf0]  ;;  %654 = vmatpush.bf16.msrb.mxu1 %v1552_v17 }
 0x386   :  { %v2153_v28 = vadd.f32 %v484_v23, %v2082_v10 }
 0x389   :  { %v479_v21 = vpop.f32.mrf.mxu2 }
 0x38a   :  { %v480_v24 = vadd.f32 %v1910_v18, %v479_v21  ;;  %v1547_v18 = vld [vmem:[#allocation3 + $0x90] sm:$0xf]  ;;  %v1543_v21 = vld [vmem:[#allocation3 + $0x80] sm:$0xf] }
 0x38b   :  { %v1548_v20 = vor.u32 %v1843_v19, %v1547_v18  ;;  %v1544_v23 = vor.u32 %v1841_v22, %v1543_v21 }
 0x38c   :  { %v485_v26 = vmax.f32 %v480_v24, 0.0  ;;  %v1854_v24 = vld [vmem:[#allocation3 + $0xf4] sm:$0xf] }
 0x38d   :  { %655 = vmatpush.bf16.msrb.mxu1 %v1548_v20  ;;  %v1604_v27 = vor.u32 %v1854_v24, %v1601_v25 }
 0x38e   :  { %v2156_v29 = vadd.f32 %v485_v26, %v2084_v11  ;;  %v1852_v26 = vld [vmem:[#allocation3 + $0xe4] sm:$0xf] }
 0x38f   :  { %708 = vmatpush.bf16.msrb.mxu0 %v1604_v27 }
 0x390   :  { %v511_v31 = vpack.c.bf16 %v2156_v29, %v2153_v28 }
 0x391   :  { %656 = vmatpush.bf16.msrb.mxu1 %v1544_v23 }
 0x392   :  { %522 = vmatpush.bf16.msrb.mxu3 %v511_v31  ;;  %v1597_v31 = vld [vmem:[#allocation3 + $0xe8] sm:$0xf0] }
 0x396   :  { %523 = vmatpush.bf16.msrb.mxu3 %v510_v33 }
 0x399   :  { %1535 = vmatmul.msk.bf16.vlgmr.msrb.gmra.mxu3 %vm242_vm1, %v2109_v50 }
 0x3a9   :  { %1536 = vmatmul.msk.bf16.gmra.mxu3 %vm242_vm1, %v2116_v51 }
 0x3b9   :  { %1537 = vmatmul.msk.bf16.gmra.mxu3 %vm242_vm1, %v2123_v52 }
 0x3c9   :  { %1538 = vmatmul.msk.bf16.gmra.mxu3 %vm242_vm1, %v2130_v53 }
 0x41c   :  { %v525_v9 = vpop.f32.mrf.mxu3 }
 0x41d   :  { %v545_v3 = vmax.f32 %v525_v9, 0.0  ;;  %v1600_v9 = vor.u32 %v1852_v26, %v1597_v31  ;;  %v1912_v26 = vld [vmem:[#allocation6 + $0x5] ss:$0 sm:$0xff] }
 0x41f   :  { %709 = vmatpush.bf16.msrb.mxu0 %v1600_v9 }
 0x424   :  { %v527_v8 = vpop.f32.mrf.mxu3 }
 0x425   :  { %v546_v62 = vmax.f32 %v527_v8, 0.0  ;;  %v1850_v8 = vld [vmem:[#allocation3 + $0xd4] sm:$0xf] }
 0x427   :  { %v553_v4 = vpack.c.bf16 %v546_v62, %v545_v3  ;;  %v1911_v3 = vld [vmem:[#allocation6 + $0x1] ss:$0 sm:$0xff] }
 0x42c   :  { %v530_v10 = vpop.f32.mrf.mxu3 }
 0x42d   :  { %v547_v61 = vmax.f32 %v530_v10, 0.0  ;;  %v1593_v10 = vld [vmem:[#allocation3 + $0xd8] sm:$0xf0] }
 0x434   :  { %v532_v11 = vpop.f32.mrf.mxu3 }
 0x435   :  { %v548_v56 = vmax.f32 %v532_v11, 0.0  ;;  %v1596_v11 = vor.u32 %v1850_v8, %v1593_v10 }
 0x437   :  { %v554_v63 = vpack.c.bf16 %v548_v56, %v547_v61  ;;  %710 = vmatpush.bf16.msrb.mxu0 %v1596_v11  ;;  %v1577_v61 = vld [vmem:[#allocation3 + $0x98] sm:$0xf0] }
 0x438   :  { %v1580_v62 = vor.u32 %v1842_v60, %v1577_v61  ;;  %v1637_v60 = vld [vmem:[#allocation3 + $0x160] sm:$0xf] }
 0x43c   :  { %v535_v34 = vpop.f32.mrf.mxu3 }
 0x43d   :  { %v549_v49 = vmax.f32 %v535_v34, 0.0  ;;  %v1848_v34 = vld [vmem:[#allocation3 + $0xc4] sm:$0xf] }
 0x444   :  { %v537_v35 = vpop.f32.mrf.mxu3 }
 0x445   :  { %v550_v40 = vmax.f32 %v537_v35, 0.0  ;;  %v1589_v35 = vld [vmem:[#allocation3 + $0xc8] sm:$0xf0] }
 0x447   :  { %v555_v57 = vpack.c.bf16 %v550_v40, %v549_v49  ;;  %v1846_v40 = vld [vmem:[#allocation3 + $0xb4] sm:$0xf] }
 0x44c   :  { %v540_v36 = vpop.f32.mrf.mxu3 }
 0x44d   :  { %v551_v38 = vmax.f32 %v540_v36, 0.0 }
 0x454   :  { %v542_v37 = vpop.f32.mrf.mxu3 }
 0x455   :  { %v552_v39 = vmax.f32 %v542_v37, 0.0  ;;  %v1592_v37 = vor.u32 %v1848_v34, %v1589_v35 }
 0x457   :  { %v556_v41 = vpack.c.bf16 %v552_v39, %v551_v38  ;;  %711 = vmatpush.bf16.msrb.mxu0 %v1592_v37 }
 0x459   :  { %561 = vmatpush.bf16.msra.mxu2 %v556_v41  ;;  %v1585_v41 = vld [vmem:[#allocation3 + $0xb8] sm:$0xf0] }
 0x45a   :  { %v1588_v43 = vor.u32 %v1846_v40, %v1585_v41 }
 0x45c   :  { %712 = vmatpush.bf16.msrb.mxu0 %v1588_v43 }
 0x45d   :  { %562 = vmatpush.bf16.msra.mxu2 %v555_v57  ;;  %v1844_v57 = vld [vmem:[#allocation3 + $0xa4] sm:$0xf] }
 0x45e   :  { %v1584_v59 = vor.u32 %v1844_v57, %v1581_v58  ;;  %v1641_v58 = vld [vmem:[#allocation3 + $0x170] sm:$0xf] }
 0x460   :  { %713 = vmatpush.bf16.msrb.mxu0 %v1584_v59  ;;  %v1871_v59 = vld [vmem:[#allocation3 + $0x174] sm:$0xf0] }
 0x461   :  { %563 = vmatpush.bf16.msra.mxu2 %v554_v63  ;;  %v1840_v63 = vld [vmem:[#allocation3 + $0x84] sm:$0xf] }
 0x462   :  { %v1576_v1 = vor.u32 %v1840_v63, %v1573_v0  ;;  %v1869_v63 = vld [vmem:[#allocation3 + $0x164] sm:$0xf0] }
 0x464   :  { %714 = vmatpush.bf16.msrb.mxu0 %v1580_v62  ;;  %v1642_v62 = vor.u32 %v1871_v59, %v1641_v58  ;;  %v1862_v58 = vld [vmem:[#allocation3 + $0x134] sm:$0xf]  ;;  %v1655_v59 = vld [vmem:[#allocation3 + $0x138] sm:$0xf0] }
 0x465   :  { %564 = vmatpush.bf16.msra.mxu2 %v553_v4 }
 0x466   :  { %894 = vmatpush.bf16.msra.mxu3 %v1642_v62  ;;  %v1651_v62 = vld [vmem:[#allocation3 + $0x128] sm:$0xf0] }
 0x468   :  { %1539 = vmatmul.msk.bf16.vlgmr.msra.gmra.mxu2 %vm306_vm2, %v2137_v14  ;;  %715 = vmatpush.bf16.msrb.mxu0 %v1576_v1 }
 0x469   :  { %763 = vmatpush.bf16.msrb.mxu2 %v2086_v44 }
 0x46d   :  { %764 = vmatpush.bf16.msrb.mxu2 %v2090_v45 }
 0x471   :  { %765 = vmatpush.bf16.msrb.mxu2 %v2094_v46 }
 0x475   :  { %766 = vmatpush.bf16.msrb.mxu2 %v2098_v47 }
 0x478   :  { %1540 = vmatmul.msk.bf16.gmra.mxu2 %vm306_vm2, %v2144_v15 }
 0x4eb   :  { %v566_v33 = vpop.f32.mrf.mxu2 }
 0x4ec   :  { %v593_v38 = vadd.f32 %v566_v33, %v2164_v32 }
 0x4f3   :  { %v568_v36 = vpop.f32.mrf.mxu2 }
 0x4f4   :  { %v594_v39 = vadd.f32 %v568_v36, %v2159_v30 }
 0x4f6   :  { %v597_v42 = vpack.c.bf16 %v594_v39, %v593_v38 }
 0x4f8   :  { %657 = vmatmul.bf16.vlgmr.msrb.gmra.mxu1 %v597_v42 }
 0x4fb   :  { %v571_v48 = vpop.f32.mrf.mxu2 }
 0x4fc   :  { %v595_v54 = vadd.f32 %v571_v48, %v2153_v28 }
 0x503   :  { %v573_v49 = vpop.f32.mrf.mxu2 }
 0x504   :  { %v596_v55 = vadd.f32 %v573_v49, %v2156_v29 }
 0x506   :  { %v598_v56 = vpack.c.bf16 %v596_v55, %v595_v54 }
 0x508   :  { %662 = vmatmul.bf16.gmra.mxu1 %v598_v56 }
 0x575   :  { %v658_v2 = vpop.f32.mrf.mxu1 }
 0x576   :  { %v659_v4 = vadd.f32 %v1911_v3, %v658_v2  ;;  %v1638_v2 = vor.u32 %v1869_v63, %v1637_v60  ;;  %v1658_v60 = vor.u32 %v1862_v58, %v1655_v59  ;;  %v1707_v58 = vld [vmem:[#allocation3 + $0x1e0] sm:$0xf] }
 0x578   :  { %v668_v7 = vmax.f32 %v659_v4, 0.0  ;;  %v1867_v4 = vld [vmem:[#allocation3 + $0x154] sm:$0xf0]  ;;  %895 = vmatpush.bf16.msra.mxu3 %v1638_v2 }
 0x57d   :  { %v660_v5 = vpop.f32.mrf.mxu1 }
 0x57e   :  { %v661_v6 = vadd.f32 %v1911_v3, %v660_v5 }
 0x580   :  { %v669_v12 = vmax.f32 %v661_v6, 0.0 }
 0x582   :  { %v672_v13 = vpack.c.bf16 %v669_v12, %v668_v7 }
 0x584   :  { %716 = vmatmul.bf16.vlgmr.msrb.gmra.mxu0 %v672_v13  ;;  %v1629_v13 = vld [vmem:[#allocation3 + $0x140] sm:$0xf] }
 0x585   :  { %v663_v16 = vpop.f32.mrf.mxu1 }
 0x586   :  { %v664_v17 = vadd.f32 %v1911_v3, %v663_v16  ;;  %v1865_v16 = vld [vmem:[#allocation3 + $0x144] sm:$0xf0] }
 0x588   :  { %v670_v20 = vmax.f32 %v664_v17, 0.0 }
 0x58d   :  { %v665_v18 = vpop.f32.mrf.mxu1 }
 0x58e   :  { %v666_v19 = vadd.f32 %v1911_v3, %v665_v18  ;;  %v1633_v3 = vld [vmem:[#allocation3 + $0x150] sm:$0xf] }
 0x58f   :  { %v1634_v12 = vor.u32 %v1867_v4, %v1633_v3  ;;  %v1856_v3 = vld [vmem:[#allocation3 + $0x104] sm:$0xf]  ;;  %v1643_v4 = vld [vmem:[#allocation3 + $0x108] sm:$0xf0] }
 0x590   :  { %v671_v21 = vmax.f32 %v666_v19, 0.0  ;;  %v1630_v19 = vor.u32 %v1865_v16, %v1629_v13 }
 0x591   :  { %896 = vmatpush.bf16.msra.mxu3 %v1634_v12 }
 0x592   :  { %v673_v22 = vpack.c.bf16 %v671_v21, %v670_v20  ;;  %v1625_v20 = vld [vmem:[#allocation3 + $0x130] sm:$0xf]  ;;  %v1863_v21 = vld [vmem:[#allocation3 + $0x134] sm:$0xf0] }
 0x594   :  { %721 = vmatmul.bf16.gmra.mxu0 %v673_v22  ;;  %v1626_v22 = vor.u32 %v1863_v21, %v1625_v20 }
 0x595   :  { %897 = vmatpush.bf16.msra.mxu3 %v1630_v19 }
 0x599   :  { %898 = vmatpush.bf16.msra.mxu3 %v1626_v22 }
 0x601   :  { %v717_v23 = vpop.f32.mrf.mxu0 }
 0x602   :  { %v718_v9 = vadd.f32 %v1912_v26, %v717_v23  ;;  %v1621_v23 = vld [vmem:[#allocation3 + $0x120] sm:$0xf] }
 0x604   :  { %v727_v35 = vmax.f32 %v718_v9, 0.0 }
 0x606   :  { %v2200_v40 = vadd.f32 %v727_v35, %v2164_v32  ;;  %v1866_v35 = vld [vmem:[#allocation3 + $0x154] sm:$0xf] }
 0x609   :  { %v719_v24 = vpop.f32.mrf.mxu0 }
 0x60a   :  { %v720_v31 = vadd.f32 %v1912_v26, %v719_v24  ;;  %v1861_v24 = vld [vmem:[#allocation3 + $0x124] sm:$0xf0] }
 0x60c   :  { %v728_v11 = vmax.f32 %v720_v31, 0.0  ;;  %v1613_v31 = vld [vmem:[#allocation3 + $0x100] sm:$0xf] }
 0x60e   :  { %v2195_v38 = vadd.f32 %v728_v11, %v2159_v30 }
 0x610   :  { %v755_v41 = vpack.c.bf16 %v2195_v38, %v2200_v40 }
 0x611   :  { %v722_v25 = vpop.f32.mrf.mxu0 }
 0x612   :  { %v723_v27 = vadd.f32 %v1912_v26, %v722_v25  ;;  %v1622_v25 = vor.u32 %v1861_v24, %v1621_v23 }
 0x614   :  { %v729_v8 = vmax.f32 %v723_v27, 0.0  ;;  %899 = vmatpush.bf16.msra.mxu3 %v1622_v25 }
 0x616   :  { %v2189_v36 = vadd.f32 %v729_v8, %v2153_v28  ;;  %v1671_v8 = vld [vmem:[#allocation3 + $0x178] sm:$0xf0] }
 0x619   :  { %v724_v33 = vpop.f32.mrf.mxu0 }
 0x61a   :  { %v725_v10 = vadd.f32 %v1912_v26, %v724_v33  ;;  %v1617_v26 = vld [vmem:[#allocation3 + $0x110] sm:$0xf]  ;;  %v1857_v33 = vld [vmem:[#allocation3 + $0x104] sm:$0xf0] }
 0x61b   :  { %v1614_v9 = vor.u32 %v1857_v33, %v1613_v31  ;;  %v1914_v33 = vld [vmem:[#allocation6 + $0x6] ss:$0 sm:$0xff] }
 0x61c   :  { %v730_v34 = vmax.f32 %v725_v10, 0.0 }
 0x61e   :  { %v2192_v37 = vadd.f32 %v730_v34, %v2156_v29 }
 0x620   :  { %v756_v39 = vpack.c.bf16 %v2192_v37, %v2189_v36 }
 0x622   :  { %767 = vmatpush.bf16.msrb.mxu2 %v756_v39  ;;  %v1663_v39 = vld [vmem:[#allocation3 + $0x158] sm:$0xf0] }
 0x626   :  { %768 = vmatpush.bf16.msrb.mxu2 %v755_v41  ;;  %v1666_v41 = vor.u32 %v1866_v35, %v1663_v39 }
 0x629   :  { %1605 = vmatmul.msk.bf16.vlgmr.msrb.gmra.mxu2 %vm242_vm1, %v2109_v50 }
 0x639   :  { %1606 = vmatmul.msk.bf16.gmra.mxu2 %vm242_vm1, %v2116_v51 }
 0x649   :  { %1607 = vmatmul.msk.bf16.gmra.mxu2 %vm242_vm1, %v2123_v52 }
 0x659   :  { %1608 = vmatmul.msk.bf16.gmra.mxu2 %vm242_vm1, %v2130_v53 }
 0x6ac   :  { %v770_v28 = vpop.f32.mrf.mxu2 }
 0x6ad   :  { %v790_v17 = vmax.f32 %v770_v28, 0.0  ;;  %v1864_v28 = vld [vmem:[#allocation3 + $0x144] sm:$0xf] }
 0x6b4   :  { %v772_v29 = vpop.f32.mrf.mxu2 }
 0x6b5   :  { %v791_v6 = vmax.f32 %v772_v29, 0.0  ;;  %v1659_v29 = vld [vmem:[#allocation3 + $0x148] sm:$0xf0] }
 0x6b7   :  { %v798_v18 = vpack.c.bf16 %v791_v6, %v790_v17 }
 0x6bc   :  { %v775_v30 = vpop.f32.mrf.mxu2 }
 0x6bd   :  { %v792_v5 = vmax.f32 %v775_v30, 0.0 }
 0x6c4   :  { %v777_v32 = vpop.f32.mrf.mxu2 }
 0x6c5   :  { %v793_v0 = vmax.f32 %v777_v32, 0.0  ;;  %v1662_v32 = vor.u32 %v1864_v28, %v1659_v29 }
 0x6c7   :  { %v799_v7 = vpack.c.bf16 %v793_v0, %v792_v5  ;;  %v1858_v0 = vld [vmem:[#allocation3 + $0x114] sm:$0xf]  ;;  %v1646_v5 = vor.u32 %v1856_v3, %v1643_v4 }
 0x6cc   :  { %v780_v42 = vpop.f32.mrf.mxu2 }
 0x6cd   :  { %v794_v61 = vmax.f32 %v780_v42, 0.0 }
 0x6d4   :  { %v782_v43 = vpop.f32.mrf.mxu2 }
 0x6d5   :  { %v795_v56 = vmax.f32 %v782_v43, 0.0 }
 0x6d7   :  { %v800_v1 = vpack.c.bf16 %v795_v56, %v794_v61  ;;  %v1860_v61 = vld [vmem:[#allocation3 + $0x124] sm:$0xf] }
 0x6d8   :  { %v1654_v63 = vor.u32 %v1860_v61, %v1651_v62 }
 0x6dc   :  { %v785_v48 = vpop.f32.mrf.mxu2 }
 0x6dd   :  { %v796_v54 = vmax.f32 %v785_v48, 0.0 }
 0x6e4   :  { %v787_v49 = vpop.f32.mrf.mxu2 }
 0x6e5   :  { %v797_v55 = vmax.f32 %v787_v49, 0.0 }
 0x6e7   :  { %v801_v57 = vpack.c.bf16 %v797_v55, %v796_v54 }
 0x6e9   :  { %806 = vmatpush.bf16.msra.mxu1 %v801_v57 }
 0x6ed   :  { %807 = vmatpush.bf16.msra.mxu1 %v800_v1  ;;  %v1647_v1 = vld [vmem:[#allocation3 + $0x118] sm:$0xf0] }
 0x6ee   :  { %v1650_v2 = vor.u32 %v1858_v0, %v1647_v1  ;;  %v1883_v0 = vld [vmem:[#allocation3 + $0x1d4] sm:$0xf0] }
 0x6f1   :  { %808 = vmatpush.bf16.msra.mxu1 %v799_v7  ;;  %v1913_v7 = vld [vmem:[#allocation6 + $0x2] ss:$0 sm:$0xff] }
 0x6f5   :  { %809 = vmatpush.bf16.msra.mxu1 %v798_v18 }
 0x6f8   :  { %1609 = vmatmul.msk.bf16.vlgmr.msra.gmra.mxu1 %vm306_vm2, %v2137_v14 }
 0x6f9   :  { %1008 = vmatpush.bf16.msrb.mxu1 %v2086_v44  ;;  %v1859_v44 = vld [vmem:[#allocation3 + $0x114] sm:$0xf0] }
 0x6fa   :  { %v1618_v27 = vor.u32 %v1859_v44, %v1617_v26 }
 0x6fc   :  { %900 = vmatpush.bf16.msra.mxu3 %v1618_v27 }
 0x6fd   :  { %1009 = vmatpush.bf16.msrb.mxu1 %v2090_v45  ;;  %v1870_v45 = vld [vmem:[#allocation3 + $0x174] sm:$0xf] }
 0x6fe   :  { %v1674_v10 = vor.u32 %v1870_v45, %v1671_v8 }
 0x700   :  { %901 = vmatpush.bf16.msra.mxu3 %v1614_v9  ;;  %953 = vmatpush.bf16.msra.mxu0 %v1674_v10 }
 0x701   :  { %1010 = vmatpush.bf16.msrb.mxu1 %v2094_v46  ;;  %v1868_v46 = vld [vmem:[#allocation3 + $0x164] sm:$0xf] }
 0x705   :  { %1011 = vmatpush.bf16.msrb.mxu1 %v2098_v47  ;;  %v1667_v47 = vld [vmem:[#allocation3 + $0x168] sm:$0xf0] }
 0x706   :  { %v1670_v34 = vor.u32 %v1868_v46, %v1667_v47 }
 0x708   :  { %1610 = vmatmul.msk.bf16.gmra.mxu1 %vm306_vm2, %v2144_v15  ;;  %954 = vmatpush.bf16.msra.mxu0 %v1670_v34 }
 0x70c   :  { %955 = vmatpush.bf16.msra.mxu0 %v1666_v41 }
 0x710   :  { %956 = vmatpush.bf16.msra.mxu0 %v1662_v32 }
 0x714   :  { %957 = vmatpush.bf16.msra.mxu0 %v1658_v60  ;;  %v1885_v60 = vld [vmem:[#allocation3 + $0x1e4] sm:$0xf0] }
 0x715   :  { %v1708_v62 = vor.u32 %v1885_v60, %v1707_v58 }
 0x718   :  { %958 = vmatpush.bf16.msra.mxu0 %v1654_v63  ;;  %v1703_v63 = vld [vmem:[#allocation3 + $0x1d0] sm:$0xf] }
 0x719   :  { %v1704_v4 = vor.u32 %v1883_v0, %v1703_v63 }
 0x71c   :  { %959 = vmatpush.bf16.msra.mxu0 %v1650_v2 }
 0x720   :  { %960 = vmatpush.bf16.msra.mxu0 %v1646_v5  ;;  %v1699_v5 = vld [vmem:[#allocation3 + $0x1c0] sm:$0xf] }
 0x775   :  { %v811_v11 = vpop.f32.mrf.mxu1 }
 0x776   :  { %v838_v42 = vadd.f32 %v811_v11, %v2200_v40 }
 0x77d   :  { %v813_v30 = vpop.f32.mrf.mxu1 }
 0x77e   :  { %v839_v43 = vadd.f32 %v813_v30, %v2195_v38 }
 0x780   :  { %v842_v48 = vpack.c.bf16 %v839_v43, %v838_v42 }
 0x782   :  { %902 = vmatmul.bf16.vlgmr.msra.gmra.mxu3 %v842_v48 }
 0x785   :  { %v816_v49 = vpop.f32.mrf.mxu1 }
 0x786   :  { %v840_v55 = vadd.f32 %v816_v49, %v2189_v36 }
 0x78d   :  { %v818_v54 = vpop.f32.mrf.mxu1 }
 0x78e   :  { %v841_v56 = vadd.f32 %v818_v54, %v2192_v37 }
 0x790   :  { %v843_v57 = vpack.c.bf16 %v841_v56, %v840_v55 }
 0x792   :  { %907 = vmatmul.bf16.gmra.mxu3 %v843_v57  ;;  %v1711_v57 = vld [vmem:[#allocation3 + $0x1f0] sm:$0xf] }
 0x805   :  { %v903_v6 = vpop.f32.mrf.mxu3 }
 0x806   :  { %v904_v12 = vadd.f32 %v1913_v7, %v903_v6  ;;  %v1881_v6 = vld [vmem:[#allocation3 + $0x1c4] sm:$0xf0] }
 0x808   :  { %v913_v17 = vmax.f32 %v904_v12, 0.0 }
 0x80d   :  { %v905_v13 = vpop.f32.mrf.mxu3 }
 0x80e   :  { %v906_v16 = vadd.f32 %v1913_v7, %v905_v13  ;;  %v1700_v13 = vor.u32 %v1881_v6, %v1699_v5 }
 0x810   :  { %v914_v18 = vmax.f32 %v906_v16, 0.0  ;;  %v1695_v16 = vld [vmem:[#allocation3 + $0x1b0] sm:$0xf] }
 0x812   :  { %v917_v19 = vpack.c.bf16 %v914_v18, %v913_v17  ;;  %v1879_v17 = vld [vmem:[#allocation3 + $0x1b4] sm:$0xf0] }
 0x813   :  { %v1696_v18 = vor.u32 %v1879_v17, %v1695_v16 }
 0x814   :  { %961 = vmatmul.bf16.vlgmr.msra.gmra.mxu0 %v917_v19  ;;  %v1691_v19 = vld [vmem:[#allocation3 + $0x1a0] sm:$0xf] }
 0x815   :  { %v908_v20 = vpop.f32.mrf.mxu3 }
 0x816   :  { %v909_v21 = vadd.f32 %v1913_v7, %v908_v20  ;;  %v1877_v20 = vld [vmem:[#allocation3 + $0x1a4] sm:$0xf0] }
 0x818   :  { %v915_v24 = vmax.f32 %v909_v21, 0.0  ;;  %v1692_v21 = vor.u32 %v1877_v20, %v1691_v19  ;;  %v1776_v19 = vld [vmem:[#allocation3 + $0x270] sm:$0xf]  ;;  %v1903_v20 = vld [vmem:[#allocation3 + $0x274] sm:$0xf0] }
 0x81d   :  { %v910_v22 = vpop.f32.mrf.mxu3 }
 0x81e   :  { %v911_v23 = vadd.f32 %v1913_v7, %v910_v22  ;;  %v1687_v22 = vld [vmem:[#allocation3 + $0x190] sm:$0xf] }
 0x820   :  { %v916_v25 = vmax.f32 %v911_v23, 0.0  ;;  %v1875_v23 = vld [vmem:[#allocation3 + $0x194] sm:$0xf0] }
 0x822   :  { %v918_v26 = vpack.c.bf16 %v916_v25, %v915_v24  ;;  %v1688_v24 = vor.u32 %v1875_v23, %v1687_v22  ;;  %v1683_v25 = vld [vmem:[#allocation3 + $0x180] sm:$0xf]  ;;  %v1777_v22 = vor.u32 %v1903_v20, %v1776_v19  ;;  %v1901_v23 = vld [vmem:[#allocation3 + $0x264] sm:$0xf0]  ;;  %v1782_v19 = vld [vmem:[#allocation3 + $0x218] sm:$0xf0] }
 0x824   :  { %966 = vmatmul.bf16.gmra.mxu0 %v918_v26  ;;  %v1873_v26 = vld [vmem:[#allocation3 + $0x184] sm:$0xf0] }
 0x891   :  { %v962_v44 = vpop.f32.mrf.mxu0 }
 0x892   :  { %v963_v46 = vadd.f32 %v1914_v33, %v962_v44  ;;  %v1684_v44 = vor.u32 %v1873_v26, %v1683_v25  ;;  %v1768_v25 = vld [vmem:[#allocation3 + $0x250] sm:$0xf]  ;;  %v1899_v26 = vld [vmem:[#allocation3 + $0x254] sm:$0xf0] }
 0x894   :  { %v972_v35 = vmax.f32 %v963_v46, 0.0  ;;  %v1733_v46 = vld [vmem:[#allocation3 + $0x1d8] sm:$0xf0] }
 0x896   :  { %v2236_v30 = vadd.f32 %v972_v35, %v2200_v40 }
 0x899   :  { %v964_v27 = vpop.f32.mrf.mxu0 }
 0x89a   :  { %v965_v45 = vadd.f32 %v1914_v33, %v964_v27  ;;  %v1886_v27 = vld [vmem:[#allocation3 + $0x1f4] sm:$0xf] }
 0x89c   :  { %v973_v11 = vmax.f32 %v965_v45, 0.0 }
 0x89e   :  { %v2231_v28 = vadd.f32 %v973_v11, %v2195_v38  ;;  %v1729_v11 = vld [vmem:[#allocation3 + $0x1c8] sm:$0xf0] }
 0x8a0   :  { %v1000_v32 = vpack.c.bf16 %v2231_v28, %v2236_v30 }
 0x8a1   :  { %v967_v31 = vpop.f32.mrf.mxu0 }
 0x8a2   :  { %v968_v9 = vadd.f32 %v1914_v33, %v967_v31  ;;  %v1741_v31 = vld [vmem:[#allocation3 + $0x1f8] sm:$0xf0] }
 0x8a4   :  { %v974_v10 = vmax.f32 %v968_v9, 0.0  ;;  %v1737_v9 = vld [vmem:[#allocation3 + $0x1e8] sm:$0xf0] }
 0x8a6   :  { %v2225_v39 = vadd.f32 %v974_v10, %v2189_v36 }
 0x8a9   :  { %v969_v8 = vpop.f32.mrf.mxu0 }
 0x8aa   :  { %v970_v47 = vadd.f32 %v1914_v33, %v969_v8  ;;  %v1884_v33 = vld [vmem:[#allocation3 + $0x1e4] sm:$0xf]  ;;  %v1882_v8 = vld [vmem:[#allocation3 + $0x1d4] sm:$0xf] }
 0x8ab   :  { %v1736_v10 = vor.u32 %v1882_v8, %v1733_v46 }
 0x8ac   :  { %v975_v34 = vmax.f32 %v970_v47, 0.0  ;;  %v1880_v47 = vld [vmem:[#allocation3 + $0x1c4] sm:$0xf] }
 0x8ad   :  { %v1732_v35 = vor.u32 %v1880_v47, %v1729_v11  ;;  %v1756_v11 = vld [vmem:[#allocation3 + $0x220] sm:$0xf] }
 0x8ae   :  { %v2228_v41 = vadd.f32 %v975_v34, %v2192_v37 }
 0x8b0   :  { %v1001_v29 = vpack.c.bf16 %v2228_v41, %v2225_v39 }
 0x8b2   :  { %1012 = vmatpush.bf16.msrb.mxu1 %v1001_v29 }
 0x8b6   :  { %1013 = vmatpush.bf16.msrb.mxu1 %v1000_v32 }
 0x8b9   :  { %1675 = vmatmul.msk.bf16.vlgmr.msrb.gmra.mxu1 %vm242_vm1, %v2109_v50 }
 0x8c9   :  { %1676 = vmatmul.msk.bf16.gmra.mxu1 %vm242_vm1, %v2116_v51  ;;  %v1887_v51 = vld [vmem:[#allocation3 + $0x1f4] sm:$0xf0] }
 0x8d9   :  { %1677 = vmatmul.msk.bf16.gmra.mxu1 %vm242_vm1, %v2123_v52  ;;  %v1712_v52 = vor.u32 %v1887_v51, %v1711_v57  ;;  %v1874_v57 = vld [vmem:[#allocation3 + $0x194] sm:$0xf]  ;;  %v1717_v51 = vld [vmem:[#allocation3 + $0x198] sm:$0xf0] }
 0x8da   :  { %v1720_v58 = vor.u32 %v1874_v57, %v1717_v51  ;;  %v1252_v51 = vld [vmem:[%s2271_s4] sm:$0x1]  ;;  %s2001_s4 = smov [#allocation8]  }
 0x8db   :  { %1139 = vmatpush.bf16.msrb.mxu0 %v1712_v52  ;;  %v1713_v52 = vld [vmem:[#allocation3 + $0x188] sm:$0xf0]  ;;  %s1390_s13 = sshll.u32 %s2001_s4, 4  ;;  %s1391_s13 = int_to_ptr.vmem [resolvable:$true] %s1390_s13 }
 0x8df   :  { %1140 = vmatpush.bf16.msrb.mxu0 %v1708_v62 }
 0x8e3   :  { %1141 = vmatpush.bf16.msrb.mxu0 %v1704_v4 }
 0x8e7   :  { %1142 = vmatpush.bf16.msrb.mxu0 %v1700_v13 }
 0x8e9   :  { %1678 = vmatmul.msk.bf16.gmra.mxu1 %vm242_vm1, %v2130_v53 }
 0x8eb   :  { %1143 = vmatpush.bf16.msrb.mxu0 %v1696_v18 }
 0x8ef   :  { %1144 = vmatpush.bf16.msrb.mxu0 %v1692_v21  ;;  %v1772_v21 = vld [vmem:[#allocation3 + $0x260] sm:$0xf] }
 0x8f3   :  { %1145 = vmatpush.bf16.msrb.mxu0 %v1688_v24  ;;  %v1773_v24 = vor.u32 %v1901_v23, %v1772_v21  ;;  %v1888_v21 = vld [vmem:[#allocation3 + $0x204] sm:$0xf] }
 0x8f7   :  { %1146 = vmatpush.bf16.msrb.mxu0 %v1684_v44  ;;  %v1769_v44 = vor.u32 %v1899_v26, %v1768_v25 }
 0x8fb   :  { %1320 = vmatpush.bf16.msra.mxu0 %v1777_v22  ;;  %v1778_v22 = vld [vmem:[#allocation3 + $0x208] sm:$0xf0] }
 0x8fc   :  { %v1781_v23 = vor.u32 %v1888_v21, %v1778_v22 }
 0x8ff   :  { %1321 = vmatpush.bf16.msra.mxu0 %v1773_v24  ;;  %v1917_v24 = vld [vmem:[#allocation6 + $0x8] ss:$0 sm:$0xff] }
 0x903   :  { %1322 = vmatpush.bf16.msra.mxu0 %v1769_v44 }
 0x936   :  { %v1015_v36 = vpop.f32.mrf.mxu1 }
 0x937   :  { %v1035_v7 = vmax.f32 %v1015_v36, 0.0 }
 0x93e   :  { %v1017_v37 = vpop.f32.mrf.mxu1 }
 0x93f   :  { %v1036_v2 = vmax.f32 %v1017_v37, 0.0 }
 0x941   :  { %v1043_v12 = vpack.c.bf16 %v1036_v2, %v1035_v7 }
 0x946   :  { %v1020_v38 = vpop.f32.mrf.mxu1 }
 0x947   :  { %v1037_v1 = vmax.f32 %v1020_v38, 0.0 }
 0x94e   :  { %v1022_v40 = vpop.f32.mrf.mxu1 }
 0x94f   :  { %v1038_v53 = vmax.f32 %v1022_v40, 0.0 }
 0x951   :  { %v1044_v3 = vpack.c.bf16 %v1038_v53, %v1037_v1 }
 0x956   :  { %v1025_v42 = vpop.f32.mrf.mxu1 }
 0x957   :  { %v1039_v59 = vmax.f32 %v1025_v42, 0.0 }
 0x95e   :  { %v1027_v43 = vpop.f32.mrf.mxu1 }
 0x95f   :  { %v1040_v50 = vmax.f32 %v1027_v43, 0.0 }
 0x961   :  { %v1045_v61 = vpack.c.bf16 %v1040_v50, %v1039_v59  ;;  %v1721_v50 = vld [vmem:[#allocation3 + $0x1a8] sm:$0xf0]  ;;  %v1872_v59 = vld [vmem:[#allocation3 + $0x184] sm:$0xf] }
 0x962   :  { %v1716_v60 = vor.u32 %v1872_v59, %v1713_v52  ;;  %v1806_v59 = vld [vmem:[#allocation3 + $0x278] sm:$0xf0]  ;;  %v1900_v52 = vld [vmem:[#allocation3 + $0x264] sm:$0xf] }
 0x966   :  { %v1030_v48 = vpop.f32.mrf.mxu1 }
 0x967   :  { %v1041_v54 = vmax.f32 %v1030_v48, 0.0  ;;  %v1878_v48 = vld [vmem:[#allocation3 + $0x1b4] sm:$0xf] }
 0x96e   :  { %v1032_v49 = vpop.f32.mrf.mxu1 }
 0x96f   :  { %v1042_v55 = vmax.f32 %v1032_v49, 0.0  ;;  %v1725_v49 = vld [vmem:[#allocation3 + $0x1b8] sm:$0xf0] }
 0x971   :  { %v1046_v56 = vpack.c.bf16 %v1042_v55, %v1041_v54  ;;  %v1728_v54 = vor.u32 %v1878_v48, %v1725_v49  ;;  %v1876_v55 = vld [vmem:[#allocation3 + $0x1a4] sm:$0xf] }
 0x973   :  { %1051 = vmatpush.bf16.msrb.mxu3 %v1046_v56  ;;  %v1724_v56 = vor.u32 %v1876_v55, %v1721_v50 }
 0x977   :  { %1052 = vmatpush.bf16.msrb.mxu3 %v1045_v61  ;;  %v1915_v61 = vld [vmem:[#allocation6 + $0x3] ss:$0 sm:$0xff] }
 0x97b   :  { %1053 = vmatpush.bf16.msrb.mxu3 %v1044_v3 }
 0x97f   :  { %1054 = vmatpush.bf16.msrb.mxu3 %v1043_v12 }
 0x982   :  { %1679 = vmatmul.msk.bf16.vlgmr.msrb.gmra.mxu3 %vm306_vm2, %v2137_v14  ;;  %v1744_v14 = vor.u32 %v1886_v27, %v1741_v31  ;;  %v1764_v31 = vld [vmem:[#allocation3 + $0x240] sm:$0xf] }
 0x984   :  { %1198 = vmatpush.bf16.msra.mxu2 %v1744_v14  ;;  %v1916_v14 = vld [vmem:[#allocation6 + $0x7] ss:$0 sm:$0xff] }
 0x992   :  { %1680 = vmatmul.msk.bf16.gmra.mxu3 %vm306_vm2, %v2144_v15  ;;  %v1740_v15 = vor.u32 %v1884_v33, %v1737_v9  ;;  %v1897_v33 = vld [vmem:[#allocation3 + $0x244] sm:$0xf0] }
 0x993   :  { %v1765_v9 = vor.u32 %v1897_v33, %v1764_v31  ;;  %v1918_v33 = vld [vmem:[#allocation6 + $0x9] ss:$0 sm:$0xff] }
 0x994   :  { %1199 = vmatpush.bf16.msra.mxu2 %v1740_v15  ;;  %v1895_v15 = vld [vmem:[#allocation3 + $0x234] sm:$0xf0] }
 0x995   :  { %1323 = vmatpush.bf16.msra.mxu0 %v1765_v9 }
 0x998   :  { %1200 = vmatpush.bf16.msra.mxu2 %v1736_v10 }
 0x99c   :  { %1201 = vmatpush.bf16.msra.mxu2 %v1732_v35 }
 0x9a0   :  { %1202 = vmatpush.bf16.msra.mxu2 %v1728_v54 }
 0x9a4   :  { %1203 = vmatpush.bf16.msra.mxu2 %v1724_v56 }
 0x9a8   :  { %1204 = vmatpush.bf16.msra.mxu2 %v1720_v58  ;;  %v1889_v58 = vld [vmem:[#allocation3 + $0x204] sm:$0xf0] }
 0x9ac   :  { %1205 = vmatpush.bf16.msra.mxu2 %v1716_v60 }
 0xa05   :  { %v1056_v45 = vpop.f32.mrf.mxu3 }
 0xa06   :  { %v1083_v29 = vadd.f32 %v1056_v45, %v2236_v30  ;;  %v1760_v45 = vld [vmem:[#allocation3 + $0x230] sm:$0xf] }
 0xa07   :  { %v1761_v10 = vor.u32 %v1895_v15, %v1760_v45 }
 0xa09   :  { %1324 = vmatpush.bf16.msra.mxu0 %v1761_v10 }
 0xa0d   :  { %v1058_v34 = vpop.f32.mrf.mxu3 }
 0xa0e   :  { %v1084_v32 = vadd.f32 %v1058_v34, %v2231_v28  ;;  %v1893_v34 = vld [vmem:[#allocation3 + $0x224] sm:$0xf0] }
 0xa10   :  { %v1087_v36 = vpack.c.bf16 %v1084_v32, %v1083_v29 }
 0xa12   :  { %1147 = vmatmul.bf16.vlgmr.msrb.gmra.mxu0 %v1087_v36 }
 0xa15   :  { %v1061_v37 = vpop.f32.mrf.mxu3 }
 0xa16   :  { %v1085_v40 = vadd.f32 %v1061_v37, %v2225_v39 }
 0xa1d   :  { %v1063_v38 = vpop.f32.mrf.mxu3 }
 0xa1e   :  { %v1086_v42 = vadd.f32 %v1063_v38, %v2228_v41  ;;  %v1757_v38 = vor.u32 %v1893_v34, %v1756_v11 }
 0xa20   :  { %v1088_v43 = vpack.c.bf16 %v1086_v42, %v1085_v40  ;;  %v1752_v40 = vld [vmem:[#allocation3 + $0x210] sm:$0xf]  ;;  %v1891_v42 = vld [vmem:[#allocation3 + $0x214] sm:$0xf0]  ;;  %1325 = vmatpush.bf16.msra.mxu0 %v1757_v38 }
 0xa21   :  { %v1753_v50 = vor.u32 %v1891_v42, %v1752_v40 }
 0xa22   :  { %1152 = vmatmul.bf16.gmra.mxu0 %v1088_v43 }
 0xa24   :  { %1326 = vmatpush.bf16.msra.mxu0 %v1753_v50 }
 0xa8f   :  { %v1148_v53 = vpop.f32.mrf.mxu0 }
 0xa90   :  { %v1149_v62 = vadd.f32 %v1915_v61, %v1148_v53  ;;  %v1802_v53 = vld [vmem:[#allocation3 + $0x268] sm:$0xf0] }
 0xa92   :  { %v1158_v1 = vmax.f32 %v1149_v62, 0.0  ;;  %v1798_v62 = vld [vmem:[#allocation3 + $0x258] sm:$0xf0] }
 0xa97   :  { %v1150_v63 = vpop.f32.mrf.mxu0 }
 0xa98   :  { %v1151_v0 = vadd.f32 %v1915_v61, %v1150_v63 }
 0xa9a   :  { %v1159_v2 = vmax.f32 %v1151_v0, 0.0  ;;  %v1896_v0 = vld [vmem:[#allocation3 + $0x244] sm:$0xf] }
 0xa9c   :  { %v1162_v3 = vpack.c.bf16 %v1159_v2, %v1158_v1  ;;  %v1794_v1 = vld [vmem:[#allocation3 + $0x248] sm:$0xf0] }
 0xa9d   :  { %v1797_v2 = vor.u32 %v1896_v0, %v1794_v1 }
 0xa9e   :  { %1206 = vmatmul.bf16.vlgmr.msra.gmra.mxu2 %v1162_v3  ;;  %v1894_v3 = vld [vmem:[#allocation3 + $0x234] sm:$0xf] }
 0xa9f   :  { %v1153_v4 = vpop.f32.mrf.mxu0 }
 0xaa0   :  { %v1154_v5 = vadd.f32 %v1915_v61, %v1153_v4  ;;  %v1790_v4 = vld [vmem:[#allocation3 + $0x238] sm:$0xf0] }
 0xaa2   :  { %v1160_v12 = vmax.f32 %v1154_v5, 0.0  ;;  %v1793_v5 = vor.u32 %v1894_v3, %v1790_v4 }
 0xaa7   :  { %v1155_v6 = vpop.f32.mrf.mxu0 }
 0xaa8   :  { %v1156_v7 = vadd.f32 %v1915_v61, %v1155_v6  ;;  %v1898_v61 = vld [vmem:[#allocation3 + $0x254] sm:$0xf]  ;;  %v1892_v6 = vld [vmem:[#allocation3 + $0x224] sm:$0xf] }
 0xaa9   :  { %v1801_v63 = vor.u32 %v1898_v61, %v1798_v62 }
 0xaaa   :  { %v1161_v13 = vmax.f32 %v1156_v7, 0.0  ;;  %v1786_v7 = vld [vmem:[#allocation3 + $0x228] sm:$0xf0] }
 0xaac   :  { %v1163_v16 = vpack.c.bf16 %v1161_v13, %v1160_v12  ;;  %v1789_v12 = vor.u32 %v1892_v6, %v1786_v7 }
 0xaae   :  { %1211 = vmatmul.bf16.gmra.mxu2 %v1163_v16 }
 0xb21   :  { %v1207_v17 = vpop.f32.mrf.mxu2 }
 0xb22   :  { %v1208_v35 = vadd.f32 %v1916_v14, %v1207_v17 }
 0xb24   :  { %v1217_v43 = vmax.f32 %v1208_v35, 0.0 }
 0xb26   :  { %v1221_v56 = vadd.f32 %v1217_v43, %v2236_v30  ;;  %v1805_v30 = vor.u32 %v1900_v52, %v1802_v53 }
 0xb29   :  { %v1209_v18 = vpop.f32.mrf.mxu2 }
 0xb2a   :  { %v1210_v46 = vadd.f32 %v1916_v14, %v1209_v18  ;;  %v1890_v18 = vld [vmem:[#allocation3 + $0x214] sm:$0xf] }
 0xb2b   :  { %v1785_v20 = vor.u32 %v1890_v18, %v1782_v19 }
 0xb2c   :  { %v1218_v36 = vmax.f32 %v1210_v46, 0.0 }
 0xb2e   :  { %v1222_v54 = vadd.f32 %v1218_v36, %v2231_v28  ;;  %v1902_v28 = vld [vmem:[#allocation3 + $0x274] sm:$0xf] }
 0xb2f   :  { %v1809_v60 = vor.u32 %v1902_v28, %v1806_v59 }
 0xb30   :  { %v1233_v57 = vpack.c.bf16 %v1222_v54, %v1221_v56 }
 0xb31   :  { %v1212_v27 = vpop.f32.mrf.mxu2  ;;  %1367 = vmatpush.bf16.msrb.mxu2 %v1809_v60 }
 0xb32   :  { %v1213_v8 = vadd.f32 %v1916_v14, %v1212_v27 }
 0xb34   :  { %v1219_v29 = vmax.f32 %v1213_v8, 0.0 }
 0xb35   :  { %1368 = vmatpush.bf16.msrb.mxu2 %v1805_v30 }
 0xb36   :  { %v1223_v48 = vadd.f32 %v1219_v29, %v2225_v39  ;;  %v1748_v39 = vld [vmem:[#allocation3 + $0x200] sm:$0xf] }
 0xb39   :  { %v1214_v47 = vpop.f32.mrf.mxu2  ;;  %1369 = vmatpush.bf16.msrb.mxu2 %v1801_v63 }
 0xb3a   :  { %v1215_v32 = vadd.f32 %v1916_v14, %v1214_v47 }
 0xb3c   :  { %v1220_v37 = vmax.f32 %v1215_v32, 0.0 }
 0xb3d   :  { %1370 = vmatpush.bf16.msrb.mxu2 %v1797_v2 }
 0xb3e   :  { %v1224_v49 = vadd.f32 %v1220_v37, %v2228_v41  ;;  %v1749_v41 = vor.u32 %v1889_v58, %v1748_v39 }
 0xb40   :  { %v1234_v55 = vpack.c.bf16 %v1224_v49, %v1223_v48  ;;  %1327 = vmatpush.bf16.msra.mxu0 %v1749_v41 }
 0xb41   :  { %1371 = vmatpush.bf16.msrb.mxu2 %v1793_v5 }
 0xb42   :  { %1262 = vmatpush.bf16.msra.mxu3 %v1234_v55 }
 0xb45   :  { %1372 = vmatpush.bf16.msrb.mxu2 %v1789_v12 }
 0xb46   :  { %1263 = vmatpush.bf16.msra.mxu3 %v1233_v57 }
 0xb49   :  { %1745 = vmatmul.msk.bf16.vlgmr.msra.gmra.mxu3 %vm118_vm0, %v1252_v51  ;;  %1373 = vmatpush.bf16.msrb.mxu2 %v1785_v20 }
 0xb4d   :  { %1374 = vmatpush.bf16.msrb.mxu2 %v1781_v23 }
 0xbcc   :  { %v1265_v13 = vpop.f32.mrf.mxu3 }
 0xbcd   :  { %v1269_v16 = vpack.c.bf16 %v1265_v13, %v1265_v13 }
 0xbcf   :  { %1328 = vmatmul.bf16.vlgmr.msra.gmra.mxu0 %v1269_v16 }
 0xbd4   :  { %v1267_v17 = vpop.f32.mrf.mxu3 }
 0xc4c   :  { %v1329_v25 = vpop.f32.mrf.mxu0 }
 0xc4d   :  { %v1330_v26 = vadd.f32 %v1917_v24, %v1329_v25 }
 0xc4f   :  { %v1333_v44 = vmax.f32 %v1330_v26, 0.0 }
 0xc51   :  { %v1334_v27 = vpack.c.bf16 %v1333_v44, %v1333_v44 }
 0xc53   :  { %1375 = vmatmul.bf16.vlgmr.msrb.gmra.mxu2 %v1334_v27 }
 0xc54   :  { %v1331_v31 = vpop.f32.mrf.mxu0 }
 0xcd6   :  { %v1376_v14 = vpop.f32.mrf.mxu2 }
 0xcd7   :  { %v1382_v9 = vadd.f32 %v1918_v33, %v1376_v14 }
 0xcd9   :  { %1384 = vst.msk [vmem:[#allocation8] sm:$0x3] %vm1383_vm3, %v1382_v9 }
 0xcda   :  { %1395 = dma.vmem_to_hbm [thread:$0]  %s1391_s13, 32, %s1393_s6, [#allocation5]  }
 0xcde   :  { %v1378_v45 = vpop.f32.mrf.mxu2 }
 0xcdf   :  { %1995 = dma.done.wait [#allocation5], 32  }
 0xce0   :  { %1996 = vsyncadd [#allocation5], 4294967264 }
 0xce1   :  { %1400 = vsyncpa [#allocation4], 1 }
 0xce2   :  { %1401 = vsyncpa [#allocation7], 1 }
 0xce3   :  { %1402 = vsyncpa [#allocation5], 1 }

</bundles_post_ra>
